<compile_context>
chip_gen: v6e
topology: v6e:2x2x1
jax: 0.10.0
libtpu: 0.0.40
codegen_flags: <defaults>
</compile_context>

<pallas_src>
import functools

import jax
import jax.numpy as jnp
from jax.experimental import pallas as pl
from jax.experimental.pallas import tpu as pltpu

LANE = 128


def _round_up(x, m):
    return (x + m - 1) // m * m


def _pad2d(a, rows, cols):
    r, c = a.shape
    return jnp.pad(a, ((0, rows - r), (0, cols - c)))


# ----------------------------------------------------------------------------
# Kernel 1: scaled feature transform   H = d_inv_sqrt * (X @ W)
# ----------------------------------------------------------------------------
def _xw_kernel(x_ref, w_ref, d_ref, h_ref):
    xw = jnp.dot(x_ref[...], w_ref[...], preferred_element_type=jnp.float32)
    h_ref[...] = (xw * d_ref[...]).astype(h_ref.dtype)


def feature_transform(x_p, w_p, d_k, *, tm, vmem_limit_bytes):
    nk_pad, fin_pad = x_p.shape
    fout_pad = w_p.shape[1]
    return pl.pallas_call(
        _xw_kernel,
        out_shape=jax.ShapeDtypeStruct((nk_pad, fout_pad), jnp.bfloat16),
        grid_spec=pltpu.PrefetchScalarGridSpec(
            num_scalar_prefetch=0,
            grid=(nk_pad // tm,),
            in_specs=[
                pl.BlockSpec((tm, fin_pad), lambda i: (i, 0)),        # X tile
                pl.BlockSpec((fin_pad, fout_pad), lambda i: (0, 0)),  # W resident
                pl.BlockSpec((tm, 1), lambda i: (i, 0)),              # d^-1/2 rows
            ],
            out_specs=pl.BlockSpec((tm, fout_pad), lambda i: (i, 0)),
        ),
        compiler_params=pltpu.CompilerParams(
            dimension_semantics=("parallel",),
            vmem_limit_bytes=vmem_limit_bytes,
        ),
    )(x_p, w_p, d_k)


# ----------------------------------------------------------------------------
# Kernel 2: aggregation   Y = d_inv_sqrt * (A_counts @ H) + b   (+ fused ReLU)
#   K collapsed: one full-width dot per row tile, H resident in VMEM.
# ----------------------------------------------------------------------------
def _agg_kernel(a_ref, h_ref, d_ref, b_ref, o_ref, *, apply_relu):
    acc = jnp.dot(a_ref[...], h_ref[...], preferred_element_type=jnp.float32)
    y = acc * d_ref[...] + b_ref[...]
    if apply_relu:
        y = jnp.maximum(y, 0.0)
    o_ref[...] = y.astype(o_ref.dtype)


def aggregate(a_p, h_p, d_m, b_p, *, tm, apply_relu, out_dtype,
              vmem_limit_bytes):
    n_rows_pad, nk_pad = a_p.shape
    fout_pad = h_p.shape[1]
    kernel = functools.partial(_agg_kernel, apply_relu=apply_relu)
    return pl.pallas_call(
        kernel,
        out_shape=jax.ShapeDtypeStruct((n_rows_pad, fout_pad), out_dtype),
        grid_spec=pltpu.PrefetchScalarGridSpec(
            num_scalar_prefetch=0,
            grid=(n_rows_pad // tm,),
            in_specs=[
                pl.BlockSpec((tm, nk_pad), lambda i: (i, 0)),           # A slab
                pl.BlockSpec((nk_pad, fout_pad), lambda i: (0, 0)),     # H resident
                pl.BlockSpec((tm, 1), lambda i: (i, 0)),                # d^-1/2 rows
                pl.BlockSpec((1, fout_pad), lambda i: (0, 0)),          # bias
            ],
            out_specs=pl.BlockSpec((tm, fout_pad), lambda i: (i, 0)),
        ),
        compiler_params=pltpu.CompilerParams(
            dimension_semantics=("parallel",),
            vmem_limit_bytes=vmem_limit_bytes,
        ),
    )(a_p, h_p, d_m, b_p)


# ----------------------------------------------------------------------------
# Tile / VMEM budget selection
# ----------------------------------------------------------------------------
def _vmem_budget_bytes():
    # Stay comfortably inside every generation's VMEM (v5e/v6e 128 MiB,
    # v7x 64 MiB physical); fall back to a conservative 24 MiB if the
    # hardware query is unavailable.
    try:
        cap = getattr(pltpu.get_tpu_info(), "vmem_capacity_bytes", 0) or 0
        if cap > 0:
            return min(cap // 2, 48 * 1024 * 1024)
    except Exception:
        pass
    return 24 * 1024 * 1024


def _choose_row_tile(n, nk_pad, fout_pad, out_itemsize, budget):
    """Largest row tile whose collapsed-K working set fits the VMEM budget;
    prefer an even number of row tiles (v7x megacore) when padding is equal."""
    feasible = []
    for tm in (512, 256, 128):
        footprint = (
            2 * tm * nk_pad * 2            # double-buffered A slab (bf16)
            + 2 * nk_pad * fout_pad * 2    # resident H (count both buffers)
            + 2 * tm * fout_pad * out_itemsize   # output tiles
            + tm * fout_pad * 4            # f32 epilogue temporaries
            + (1 << 20)                    # slack: bias, d, semaphores, ...
        )
        if footprint <= budget:
            feasible.append(tm)
    if not feasible:
        # TODO(synk): K-tiled fallback with resident H for very large graphs.
        return 128
    tm = feasible[0]
    if len(feasible) > 1:
        smaller = feasible[1]
        rows_big = _round_up(n, tm)
        rows_small = _round_up(n, smaller)
        if (rows_small == rows_big
                and (rows_big // tm) % 2 == 1
                and (rows_small // smaller) % 2 == 0):
            tm = smaller  # same padded rows, but splits evenly across 2 TCs
    return tm


# ----------------------------------------------------------------------------
# Graph preprocessing (hoisted out of the hot path; done once)
# ----------------------------------------------------------------------------
def build_normalized_adjacency_factored(edge_index, num_nodes):
    """Dense edge-count matrix A (duplicates sum, one self-loop per node) and
    d^-1/2 so that A_hat = diag(d^-1/2) A diag(d^-1/2)."""
    src = edge_index[0]
    dst = edge_index[1]
    adj = jnp.zeros((num_nodes, num_nodes), dtype=jnp.float32)
    adj = adj.at[dst, src].add(1.0)                 # duplicate edges sum (PyG)
    diag = jnp.arange(num_nodes)
    adj = adj.at[diag, diag].set(1.0)               # add_remaining_self_loops
    deg = jnp.sum(adj, axis=1)
    d_inv_sqrt = jnp.where(deg > 0, jax.lax.rsqrt(deg), 0.0)
    return adj, d_inv_sqrt


def gcn_prepare(x, edge_index, params):
    """One-time padding + dtype casts of all static operands (kept out of the
    jitted per-call forward so the N^2 pad/cast is not repeated)."""
    w1, b1, w2, b2 = params
    n, fin = x.shape
    hid = w1.shape[1]
    ncls = w2.shape[1]

    adj, d_inv_sqrt = build_normalized_adjacency_factored(edge_index, n)

    nk_pad = _round_up(n, LANE)        # reduction/column dim: lane granularity
    fin_pad = _round_up(fin, LANE)
    hid_pad = _round_up(hid, LANE)
    cls_pad = _round_up(ncls, LANE)
    fout_max = max(hid_pad, cls_pad)

    budget = _vmem_budget_bytes()
    tm = _choose_row_tile(n, nk_pad, fout_max, 4, budget)
    n_rows_pad = _round_up(n, tm)      # tm is a multiple of 128 -> >= nk_pad
    vmem_limit = int(min(budget + (8 << 20), 48 * 1024 * 1024))

    d_col = d_inv_sqrt[:, None].astype(jnp.float32)

    arrays = (
        _pad2d(adj, n_rows_pad, nk_pad).astype(jnp.bfloat16),   # exact counts
        _pad2d(x, nk_pad, fin_pad).astype(jnp.bfloat16),
        _pad2d(d_col, nk_pad, 1),                                # scales H rows
        _pad2d(d_col, n_rows_pad, 1),                            # scales out rows
        _pad2d(w1, fin_pad, hid_pad).astype(jnp.bfloat16),
        _pad2d(b1.reshape(1, -1), 1, hid_pad).astype(jnp.float32),
        _pad2d(w2, hid_pad, cls_pad).astype(jnp.bfloat16),
        _pad2d(b2.reshape(1, -1), 1, cls_pad).astype(jnp.float32),
    )
    meta = dict(n=n, ncls=ncls, nk_pad=nk_pad, tm=tm,
                vmem_limit_bytes=vmem_limit)
    return arrays, meta


# ----------------------------------------------------------------------------
# GCN forward (inference): dropout(id) -> conv1 -> relu -> dropout(id) -> conv2
# ----------------------------------------------------------------------------
def gcn_forward(a_p, x_p, d_k, d_m, w1_p, b1_p, w2_p, b2_p,
                *, tm, nk_pad, vmem_limit_bytes):
    # F.dropout(p=0.6, training=False) == identity.
    tmx = 256 if nk_pad % 256 == 0 else 128   # row tile for the XW kernels

    h1 = feature_transform(x_p, w1_p, d_k, tm=tmx,
                           vmem_limit_bytes=vmem_limit_bytes)
    y1 = aggregate(a_p, h1, d_m, b1_p, tm=tm, apply_relu=True,
                   out_dtype=jnp.bfloat16, vmem_limit_bytes=vmem_limit_bytes)
    # Layer-2 transform only needs the first nk_pad node rows of layer-1's out.
    h2 = feature_transform(y1[:nk_pad], w2_p, d_k, tm=tmx,
                           vmem_limit_bytes=vmem_limit_bytes)
    out = aggregate(a_p, h2, d_m, b2_p, tm=tm, apply_relu=False,
                    out_dtype=jnp.float32, vmem_limit_bytes=vmem_limit_bytes)
    return out


def init_params(key, num_features, hidden_channels, num_classes):
    k1, k2 = jax.random.split(key)
    w1 = jax.random.normal(k1, (num_features, hidden_channels), jnp.float32) * (
        (2.0 / (num_features + hidden_channels)) ** 0.5
    )
    b1 = jnp.zeros((1, hidden_channels), jnp.float32)
    w2 = jax.random.normal(k2, (hidden_channels, num_classes), jnp.float32) * (
        (2.0 / (hidden_channels + num_classes)) ** 0.5
    )
    b2 = jnp.zeros((1, num_classes), jnp.float32)
    return (w1, b1, w2, b2)


if __name__ == "__main__":
    # Small synthetic "Cora-like" graph (real Cora: N=2708, F=1433, hid=16,
    # classes=7 works with the same tiling logic).
    NUM_NODES = 300
    NUM_FEATURES = 64
    HIDDEN_CHANNELS = 32
    NUM_CLASSES = 8
    NUM_EDGES = 1200

    key = jax.random.PRNGKey(0)
    k_x, k_e, k_p = jax.random.split(key, 3)

    x = jax.random.normal(k_x, (NUM_NODES, NUM_FEATURES), jnp.float32)
    edge_index = jax.random.randint(k_e, (2, NUM_EDGES), 0, NUM_NODES, jnp.int32)
    params = init_params(k_p, NUM_FEATURES, HIDDEN_CHANNELS, NUM_CLASSES)

    # Hoisted one-time preprocessing (pad + cast + adjacency build).
    padded, meta = gcn_prepare(x, edge_index, params)
    fwd = jax.jit(functools.partial(
        gcn_forward, tm=meta["tm"], nk_pad=meta["nk_pad"],
        vmem_limit_bytes=meta["vmem_limit_bytes"]))

    out_p = jax.block_until_ready(fwd(*padded))
    out = out_p[:NUM_NODES, :NUM_CLASSES]

    # Pure-JAX reference with matched bf16 rounding of operands/intermediates.
    w1, b1, w2, b2 = params
    adj, d_inv_sqrt = build_normalized_adjacency_factored(edge_index, NUM_NODES)
    f32, bf = jnp.float32, jnp.bfloat16
    a32 = adj.astype(f32)                      # small counts: exact in bf16
    x32 = x.astype(bf).astype(f32)
    w1_32 = w1.astype(bf).astype(f32)
    w2_32 = w2.astype(bf).astype(f32)
    d_col = d_inv_sqrt[:, None].astype(f32)

    h1_ref = (d_col * (x32 @ w1_32)).astype(bf).astype(f32)
    y1_ref = jnp.maximum(d_col * (a32 @ h1_ref) + b1, 0.0).astype(bf).astype(f32)
    h2_ref = (d_col * (y1_ref @ w2_32)).astype(bf).astype(f32)
    ref = d_col * (a32 @ h2_ref) + b2

    assert out.shape == (NUM_NODES, NUM_CLASSES)
    assert jnp.allclose(out, ref, atol=2e-2, rtol=2e-2), float(
        jnp.max(jnp.abs(out - ref))
    )

    print("KERNEL_OK")
</pallas_src>

<mosaic_0001>
module attributes {stable_mosaic.version = 11 : i64} {
  func.func @_xw_kernel(%arg0: i32, %arg1: memref<128x128xbf16, #tpu.memory_space<vmem>>, %arg2: memref<128x128xbf16, #tpu.memory_space<vmem>>, %arg3: memref<128x1xf32, #tpu.memory_space<vmem>>, %arg4: memref<128x128xbf16, #tpu.memory_space<vmem>>) attributes {dimension_semantics = [#tpu.dimension_semantics<parallel>], iteration_bounds = array<i64: 3>, scalar_prefetch = 0 : i64, scratch_operands = 0 : i64, tpu.core_type = #tpu.core_type<tc>, window_params = [{transform_indices = @transform_0, window_bounds = array<i64: 128, 128>}, {pipeline_mode = #tpu.pipeline_mode<synchronous>, transform_indices = @transform_1, window_bounds = array<i64: 128, 128>}, {transform_indices = @transform_2, window_bounds = array<i64: 128, 1>}, {transform_indices = @transform_3, window_bounds = array<i64: 128, 128>}]} {
    %c0 = arith.constant 0 : index
    %c0_0 = arith.constant 0 : index
    %0 = vector.load %arg1[%c0, %c0_0] : memref<128x128xbf16, #tpu.memory_space<vmem>>, vector<128x128xbf16>
    %c0_1 = arith.constant 0 : index
    %c0_2 = arith.constant 0 : index
    %1 = vector.load %arg2[%c0_1, %c0_2] : memref<128x128xbf16, #tpu.memory_space<vmem>>, vector<128x128xbf16>
    %cst = arith.constant dense<0.000000e+00> : vector<128x128xf32>
    %2 = tpu.matmul %0, %1, %cst {dimension_numbers = #tpu.dot_dimension_numbers<[1], [0], [0], [1], [0, 0, 1, 1], [], []>} : vector<128x128xbf16>, vector<128x128xbf16>, vector<128x128xf32> -> vector<128x128xf32>
    %c0_3 = arith.constant 0 : index
    %c0_4 = arith.constant 0 : index
    %3 = vector.load %arg3[%c0_3, %c0_4] : memref<128x1xf32, #tpu.memory_space<vmem>>, vector<128x1xf32>
    %4 = vector.broadcast %3 : vector<128x1xf32> to vector<128x128xf32>
    %5 = arith.mulf %2, %4 : vector<128x128xf32>
    %6 = arith.truncf %5 : vector<128x128xf32> to vector<128x128xbf16>
    %c0_5 = arith.constant 0 : index
    %c0_6 = arith.constant 0 : index
    %7 = vector.load %arg4[%c0_5, %c0_6] : memref<128x128xbf16, #tpu.memory_space<vmem>>, vector<128x128xbf16>
    tpu.vector_store %arg4[%c0_5, %c0_6], %6 {strides = array<i32>} : memref<128x128xbf16, #tpu.memory_space<vmem>>, vector<128x128xbf16>,
    return
  }
  func.func @transform_0(%arg0: i32) -> (i32, i32) {
    %c0_i32 = arith.constant 0 : i32
    %c0_i32_0 = arith.constant 0 : i32
    return %arg0, %c0_i32 : i32, i32
  }
  func.func @transform_1(%arg0: i32) -> (i32, i32) {
    %c0_i32 = arith.constant 0 : i32
    %c0_i32_0 = arith.constant 0 : i32
    %c0_i32_1 = arith.constant 0 : i32
    return %c0_i32, %c0_i32_0 : i32, i32
  }
  func.func @transform_2(%arg0: i32) -> (i32, i32) {
    %c0_i32 = arith.constant 0 : i32
    %c0_i32_0 = arith.constant 0 : i32
    return %arg0, %c0_i32 : i32, i32
  }
  func.func @transform_3(%arg0: i32) -> (i32, i32) {
    %c0_i32 = arith.constant 0 : i32
    %c0_i32_0 = arith.constant 0 : i32
    return %arg0, %c0_i32 : i32, i32
  }
}

module attributes {stable_mosaic.version = 11 : i64} {
  func.func @_agg_kernel(%arg0: i32, %arg1: memref<256x384xbf16, #tpu.memory_space<vmem>>, %arg2: memref<384x128xbf16, #tpu.memory_space<vmem>>, %arg3: memref<256x1xf32, #tpu.memory_space<vmem>>, %arg4: memref<1x128xf32, #tpu.memory_space<vmem>>, %arg5: memref<256x128xbf16, #tpu.memory_space<vmem>>) attributes {dimension_semantics = [#tpu.dimension_semantics<parallel>], iteration_bounds = array<i64: 2>, scalar_prefetch = 0 : i64, scratch_operands = 0 : i64, tpu.core_type = #tpu.core_type<tc>, window_params = [{transform_indices = @transform_0, window_bounds = array<i64: 256, 384>}, {pipeline_mode = #tpu.pipeline_mode<synchronous>, transform_indices = @transform_1, window_bounds = array<i64: 384, 128>}, {transform_indices = @transform_2, window_bounds = array<i64: 256, 1>}, {pipeline_mode = #tpu.pipeline_mode<synchronous>, transform_indices = @transform_3, window_bounds = array<i64: 1, 128>}, {transform_indices = @transform_4, window_bounds = array<i64: 256, 128>}]} {
    %c0 = arith.constant 0 : index
    %c0_0 = arith.constant 0 : index
    %0 = vector.load %arg1[%c0, %c0_0] : memref<256x384xbf16, #tpu.memory_space<vmem>>, vector<256x384xbf16>
    %c0_1 = arith.constant 0 : index
    %c0_2 = arith.constant 0 : index
    %1 = vector.load %arg2[%c0_1, %c0_2] : memref<384x128xbf16, #tpu.memory_space<vmem>>, vector<384x128xbf16>
    %cst = arith.constant dense<0.000000e+00> : vector<256x128xf32>
    %2 = tpu.matmul %0, %1, %cst {dimension_numbers = #tpu.dot_dimension_numbers<[1], [0], [0], [1], [0, 0, 1, 1], [], []>} : vector<256x384xbf16>, vector<384x128xbf16>, vector<256x128xf32> -> vector<256x128xf32>
    %c0_3 = arith.constant 0 : index
    %c0_4 = arith.constant 0 : index
    %3 = vector.load %arg3[%c0_3, %c0_4] : memref<256x1xf32, #tpu.memory_space<vmem>>, vector<256x1xf32>
    %4 = vector.broadcast %3 : vector<256x1xf32> to vector<256x128xf32>
    %5 = arith.mulf %2, %4 : vector<256x128xf32>
    %c0_5 = arith.constant 0 : index
    %c0_6 = arith.constant 0 : index
    %6 = vector.load %arg4[%c0_5, %c0_6] : memref<1x128xf32, #tpu.memory_space<vmem>>, vector<1x128xf32>
    %7 = vector.broadcast %6 : vector<1x128xf32> to vector<256x128xf32>
    %8 = arith.addf %5, %7 : vector<256x128xf32>
    %cst_7 = arith.constant 0.000000e+00 : f32
    %9 = vector.broadcast %cst_7 : f32 to vector<256x128xf32>
    %10 = arith.maximumf %8, %9 : vector<256x128xf32>
    %11 = arith.truncf %10 : vector<256x128xf32> to vector<256x128xbf16>
    %c0_8 = arith.constant 0 : index
    %c0_9 = arith.constant 0 : index
    %12 = vector.load %arg5[%c0_8, %c0_9] : memref<256x128xbf16, #tpu.memory_space<vmem>>, vector<256x128xbf16>
    tpu.vector_store %arg5[%c0_8, %c0_9], %11 {strides = array<i32>} : memref<256x128xbf16, #tpu.memory_space<vmem>>, vector<256x128xbf16>,
    return
  }
  func.func @transform_0(%arg0: i32) -> (i32, i32) {
    %c0_i32 = arith.constant 0 : i32
    %c0_i32_0 = arith.constant 0 : i32
    return %arg0, %c0_i32 : i32, i32
  }
  func.func @transform_1(%arg0: i32) -> (i32, i32) {
    %c0_i32 = arith.constant 0 : i32
    %c0_i32_0 = arith.constant 0 : i32
    %c0_i32_1 = arith.constant 0 : i32
    return %c0_i32, %c0_i32_0 : i32, i32
  }
  func.func @transform_2(%arg0: i32) -> (i32, i32) {
    %c0_i32 = arith.constant 0 : i32
    %c0_i32_0 = arith.constant 0 : i32
    return %arg0, %c0_i32 : i32, i32
  }
  func.func @transform_3(%arg0: i32) -> (i32, i32) {
    %c0_i32 = arith.constant 0 : i32
    %c0_i32_0 = arith.constant 0 : i32
    %c0_i32_1 = arith.constant 0 : i32
    return %c0_i32, %c0_i32_0 : i32, i32
  }
  func.func @transform_4(%arg0: i32) -> (i32, i32) {
    %c0_i32 = arith.constant 0 : i32
    %c0_i32_0 = arith.constant 0 : i32
    return %arg0, %c0_i32 : i32, i32
  }
}

module attributes {stable_mosaic.version = 11 : i64} {
  func.func @_agg_kernel(%arg0: i32, %arg1: memref<256x384xbf16, #tpu.memory_space<vmem>>, %arg2: memref<384x128xbf16, #tpu.memory_space<vmem>>, %arg3: memref<256x1xf32, #tpu.memory_space<vmem>>, %arg4: memref<1x128xf32, #tpu.memory_space<vmem>>, %arg5: memref<256x128xf32, #tpu.memory_space<vmem>>) attributes {dimension_semantics = [#tpu.dimension_semantics<parallel>], iteration_bounds = array<i64: 2>, scalar_prefetch = 0 : i64, scratch_operands = 0 : i64, tpu.core_type = #tpu.core_type<tc>, window_params = [{transform_indices = @transform_0, window_bounds = array<i64: 256, 384>}, {pipeline_mode = #tpu.pipeline_mode<synchronous>, transform_indices = @transform_1, window_bounds = array<i64: 384, 128>}, {transform_indices = @transform_2, window_bounds = array<i64: 256, 1>}, {pipeline_mode = #tpu.pipeline_mode<synchronous>, transform_indices = @transform_3, window_bounds = array<i64: 1, 128>}, {transform_indices = @transform_4, window_bounds = array<i64: 256, 128>}]} {
    %c0 = arith.constant 0 : index
    %c0_0 = arith.constant 0 : index
    %0 = vector.load %arg1[%c0, %c0_0] : memref<256x384xbf16, #tpu.memory_space<vmem>>, vector<256x384xbf16>
    %c0_1 = arith.constant 0 : index
    %c0_2 = arith.constant 0 : index
    %1 = vector.load %arg2[%c0_1, %c0_2] : memref<384x128xbf16, #tpu.memory_space<vmem>>, vector<384x128xbf16>
    %cst = arith.constant dense<0.000000e+00> : vector<256x128xf32>
    %2 = tpu.matmul %0, %1, %cst {dimension_numbers = #tpu.dot_dimension_numbers<[1], [0], [0], [1], [0, 0, 1, 1], [], []>} : vector<256x384xbf16>, vector<384x128xbf16>, vector<256x128xf32> -> vector<256x128xf32>
    %c0_3 = arith.constant 0 : index
    %c0_4 = arith.constant 0 : index
    %3 = vector.load %arg3[%c0_3, %c0_4] : memref<256x1xf32, #tpu.memory_space<vmem>>, vector<256x1xf32>
    %4 = vector.broadcast %3 : vector<256x1xf32> to vector<256x128xf32>
    %5 = arith.mulf %2, %4 : vector<256x128xf32>
    %c0_5 = arith.constant 0 : index
    %c0_6 = arith.constant 0 : index
    %6 = vector.load %arg4[%c0_5, %c0_6] : memref<1x128xf32, #tpu.memory_space<vmem>>, vector<1x128xf32>
    %7 = vector.broadcast %6 : vector<1x128xf32> to vector<256x128xf32>
    %8 = arith.addf %5, %7 : vector<256x128xf32>
    %c0_7 = arith.constant 0 : index
    %c0_8 = arith.constant 0 : index
    %9 = vector.load %arg5[%c0_7, %c0_8] : memref<256x128xf32, #tpu.memory_space<vmem>>, vector<256x128xf32>
    tpu.vector_store %arg5[%c0_7, %c0_8], %8 {strides = array<i32>} : memref<256x128xf32, #tpu.memory_space<vmem>>, vector<256x128xf32>,
    return
  }
  func.func @transform_0(%arg0: i32) -> (i32, i32) {
    %c0_i32 = arith.constant 0 : i32
    %c0_i32_0 = arith.constant 0 : i32
    return %arg0, %c0_i32 : i32, i32
  }
  func.func @transform_1(%arg0: i32) -> (i32, i32) {
    %c0_i32 = arith.constant 0 : i32
    %c0_i32_0 = arith.constant 0 : i32
    %c0_i32_1 = arith.constant 0 : i32
    return %c0_i32, %c0_i32_0 : i32, i32
  }
  func.func @transform_2(%arg0: i32) -> (i32, i32) {
    %c0_i32 = arith.constant 0 : i32
    %c0_i32_0 = arith.constant 0 : i32
    return %arg0, %c0_i32 : i32, i32
  }
  func.func @transform_3(%arg0: i32) -> (i32, i32) {
    %c0_i32 = arith.constant 0 : i32
    %c0_i32_0 = arith.constant 0 : i32
    %c0_i32_1 = arith.constant 0 : i32
    return %c0_i32, %c0_i32_0 : i32, i32
  }
  func.func @transform_4(%arg0: i32) -> (i32, i32) {
    %c0_i32 = arith.constant 0 : i32
    %c0_i32_0 = arith.constant 0 : i32
    return %arg0, %c0_i32 : i32, i32
  }
}

</mosaic_0001>

<bundles_post_ra>
// kernel: gcn_forward.4
= control target key start
LH: loop header
LB: loop body
LE: loop exit
PB: predicated region body
PF: predicated region fallthrough
CT: control target
= control target key end

     0   :  { %s910_s12 = smov 0   ;;  %s1000_s0 = inlined_call_operand.vmem [shape: bf16[384,128], index: 0, kind: input, shape index: {}]   ;;  %s1001_s1 = inlined_call_operand.vmem [shape: bf16[128,128], index: 1, kind: input, shape index: {}]   ;;  %s1002_s2 = inlined_call_operand.vmem [shape: f32[384,1], index: 2, kind: input, shape index: {}]   ;;  %s1003_s3 = inlined_call_operand.vmem [shape: bf16[384,128], index: 3, kind: output, shape index: {}]  }
   0x1 LB: > { %s682_s13 = sadd.s32 4294967295, %s887_s12   ;;  %p686_p0 = scmp.ge.s32.totalorder %s887_s12, 1  ;;  %s887_s12 = sphi %s910_s12, %s13_s12  }
   0x2   : > { %p149_p1 = scmp.lt.s32.totalorder %s887_s12, 4 }
   0x4   : > { %p150_p2 = pnand %p686_p0, %p149_p1 }
   0x5   : > { %s687_s16 = sshll.u32 (!%p150_p2), %s682_s13, 4 }
   0x6   : > { %153 = sbr.rel (%p150_p2) target bundleno = 256 (0x100), region = 32  ;;  %p179_p3 = scmp.lt.s32.totalorder (!%p150_p2), %s687_s16, 47 }
   0xb   : > { %v865_v0 = vld [vmem:[%s1001_s1 + $0x38] sm:$0xff]   ;;  %v866_v1 = vld [vmem:[%s1001_s1 + $0x30] sm:$0xff]   ;;  %s1005_s16 = smov (!%p179_p3, %s687_s16), 47  ;;  %v867_v2 = vld [vmem:[%s1001_s1 + $0x28] sm:$0xff]   ;;  %v889_v3 = vmov 0  }
   0xc   : > { %806 = vmatprep.subr.bf16.mxu0 %v865_v0  ;;  %838 = vmatprep.subr.bf16.mxu1 %v865_v0  ;;  %s688_s21 = sshll.u32 %s1005_s16, 2  ;;  %v868_v4 = vld [vmem:[%s1001_s1 + $0x20] sm:$0xff]   ;;  %s690_s27 = sshll.u32 %s1005_s16, 3  ;;  %v869_v7 = vld [vmem:[%s1001_s1 + $0x18] sm:$0xff]   ;;  %v870_v8 = vld [vmem:[%s1001_s1 + $0x10] sm:$0xff]  }
   0xd   : > { %807 = vmatpush3.bf16.msra.mxu0 %v865_v0  ;;  %846 = vmatpush3.bf16.msra.mxu1 %v865_v0  ;;  %s935_s24 = scalar_lea.vmem %s1000_s0, %s688_s21  ;;  %s949_s5 = scalar_lea.vmem %s1002_s2, %s690_s27  ;;  %v871_v13 = vld [vmem:[%s1001_s1 + $0x8] sm:$0xff]   ;;  %v872_v16 = vld [vmem:[%s1001_s1] sm:$0xff]  }
   0xe   : > { %808 = vmatprep.subr.bf16.mxu0 %v866_v1  ;;  %839 = vmatprep.subr.bf16.mxu1 %v866_v1  ;;  %v873_v5 = vld [vmem:[%s935_s24] sm:$0xff]   ;;  %v424_v9 = vld [vmem:[%s949_s5 + $0x10] sm:$0xff]  ;;  %v425_v11 = vld [vmem:[%s949_s5 + $0x18] sm:$0xff]  ;;  %s987_s15 = scalar_lea.vmem %s1003_s3, %s688_s21 }
   0xf   : > { %864 = vset.pattern.permute.xlu1 %v889_v3  ;;  %863 = vset.pattern.permute.xlu0 %v889_v3  ;;  %v874_v6 = vld [vmem:[%s935_s24 + $0x20] sm:$0xff]   ;;  %v423_v12 = vld [vmem:[%s949_s5 + $0x8] sm:$0xff]  ;;  %v429_v17 = vld [vmem:[%s949_s5 + $0x38] sm:$0xff] }
  0x10   : > { %822 = vmatprep.mubr.bf16.mxu0 %v873_v5  ;;  %830 = vmatprep.mubr.bf16.mxu1 %v874_v6  ;;  %v422_v10 = vld [vmem:[%s949_s5] sm:$0xff]  ;;  %v427_v14 = vld [vmem:[%s949_s5 + $0x28] sm:$0xff]  ;;  %v428_v18 = vld [vmem:[%s949_s5 + $0x30] sm:$0xff] }
  0x11   : > { %809 = vmatpush3.bf16.msra.mxu0 %v866_v1  ;;  %847 = vmatpush3.bf16.msra.mxu1 %v866_v1  ;;  %v426_v15 = vld [vmem:[%s949_s5 + $0x20] sm:$0xff]  ;;  %v875_v19 = vld [vmem:[%s935_s24 + $0x8] sm:$0xff]   ;;  %v877_v23 = vld [vmem:[%s935_s24 + $0x10] sm:$0xff]  }
  0x12   : > { %810 = vmatprep.subr.bf16.mxu0 %v867_v2  ;;  %840 = vmatprep.subr.bf16.mxu1 %v867_v2  ;;  %v876_v20 = vld [vmem:[%s935_s24 + $0x28] sm:$0xff]   ;;  %v430_v22 = vld [vmem:[%s949_s5 + $0x40] sm:$0xff]  ;;  %v878_v24 = vld [vmem:[%s935_s24 + $0x30] sm:$0xff]  }
  0x13   : > { %450 = vperm.xlu1 %864, %v424_v9   ;;  %440 = vperm.xlu0 %863, %v422_v10   ;;  %v431_v21 = vld [vmem:[%s949_s5 + $0x48] sm:$0xff]  ;;  %v433_v25 = vld [vmem:[%s949_s5 + $0x58] sm:$0xff]  ;;  %v432_v26 = vld [vmem:[%s949_s5 + $0x50] sm:$0xff] }
  0x14   : > { %v879_v27 = vld [vmem:[%s935_s24 + $0x18] sm:$0xff]   ;;  %v435_v29 = vld [vmem:[%s949_s5 + $0x68] sm:$0xff]  ;;  %v434_v30 = vld [vmem:[%s949_s5 + $0x60] sm:$0xff] }
  0x15   : > { %811 = vmatpush3.bf16.msra.mxu0 %v867_v2  ;;  %848 = vmatpush3.bf16.msra.mxu1 %v867_v2  ;;  %v880_v28 = vld [vmem:[%s935_s24 + $0x38] sm:$0xff]   ;;  %v436_v32 = vld [vmem:[%s949_s5 + $0x70] sm:$0xff] }
  0x16   : > { %812 = vmatprep.subr.bf16.mxu0 %v868_v4  ;;  %841 = vmatprep.subr.bf16.mxu1 %v868_v4  ;;  %v437_v31 = vld [vmem:[%s949_s5 + $0x78] sm:$0xff] }
  0x17   : > { %455 = vperm.xlu1 %864, %v425_v11   ;;  %445 = vperm.xlu0 %863, %v423_v12  }
  0x19   : > { %813 = vmatpush3.bf16.msra.mxu0 %v868_v4  ;;  %849 = vmatpush3.bf16.msra.mxu1 %v868_v4 }
  0x1a   : > { %814 = vmatprep.subr.bf16.mxu0 %v869_v7  ;;  %842 = vmatprep.subr.bf16.mxu1 %v869_v7 }
  0x1b   : > { %465 = vperm.xlu1 %864, %v427_v14   ;;  %460 = vperm.xlu0 %863, %v426_v15  }
  0x1d   : > { %815 = vmatpush3.bf16.msra.mxu0 %v869_v7  ;;  %850 = vmatpush3.bf16.msra.mxu1 %v869_v7 }
  0x1e   : > { %816 = vmatprep.subr.bf16.mxu0 %v870_v8  ;;  %843 = vmatprep.subr.bf16.mxu1 %v870_v8 }
  0x1f   : > { %475 = vperm.xlu1 %864, %v429_v17   ;;  %470 = vperm.xlu0 %863, %v428_v18  }
  0x21   : > { %817 = vmatpush3.bf16.msra.mxu0 %v870_v8  ;;  %851 = vmatpush3.bf16.msra.mxu1 %v870_v8 }
  0x22   : > { %818 = vmatprep.subr.bf16.mxu0 %v871_v13  ;;  %844 = vmatprep.subr.bf16.mxu1 %v871_v13 }
  0x23   : > { %485 = vperm.xlu1 %864, %v431_v21   ;;  %480 = vperm.xlu0 %863, %v430_v22  }
  0x25   : > { %819 = vmatpush3.bf16.msra.mxu0 %v871_v13  ;;  %852 = vmatpush3.bf16.msra.mxu1 %v871_v13 }
  0x26   : > { %820 = vmatprep.subr.bf16.mxu0 %v872_v16  ;;  %845 = vmatprep.subr.bf16.mxu1 %v872_v16 }
  0x27   : > { %495 = vperm.xlu1 %864, %v433_v25   ;;  %490 = vperm.xlu0 %863, %v432_v26  }
  0x29   : > { %821 = vmatpush3.bf16.msra.mxu0 %v872_v16  ;;  %853 = vmatpush3.bf16.msra.mxu1 %v872_v16 }
  0x2b   : > { %505 = vperm.xlu1 %864, %v435_v29   ;;  %500 = vperm.xlu0 %863, %v434_v30  }
  0x2c   : > { %823 = vmatmul.mubr.bf16.vlgmr.msra.gmra.mxu0 %v875_v19  ;;  %831 = vmatmul.mubr.bf16.vlgmr.msra.gmra.mxu1 %v876_v20 }
  0x2d   : > { %826 = vmatprep.mubr.bf16.mxu0 %v877_v23  ;;  %834 = vmatprep.mubr.bf16.mxu1 %v878_v24 }
  0x2f   : > { %515 = vperm.xlu1 %864, %v437_v31   ;;  %510 = vperm.xlu0 %863, %v436_v32  }
  0x34   : > { %827 = vmatmul.mubr.bf16.gmra.mxu0 %v879_v27  ;;  %835 = vmatmul.mubr.bf16.gmra.mxu1 %v880_v28 }
  0x8e   : > { %v451_v33 = vpop.permute.xlu1 %450  ;;  %v441_v34 = vpop.permute.xlu0 %440 }
  0x92   : > { %v456_v35 = vpop.permute.xlu1 %455  ;;  %v446_v36 = vpop.permute.xlu0 %445 }
  0x96   : > { %v466_v37 = vpop.permute.xlu1 %465  ;;  %v461_v38 = vpop.permute.xlu0 %460 }
  0x9a   : > { %v476_v39 = vpop.permute.xlu1 %475  ;;  %v471_v40 = vpop.permute.xlu0 %470 }
  0x9e   : > { %v486_v41 = vpop.permute.xlu1 %485  ;;  %v481_v42 = vpop.permute.xlu0 %480 }
  0xa2   : > { %v496_v43 = vpop.permute.xlu1 %495  ;;  %v491_v44 = vpop.permute.xlu0 %490 }
  0xa6   : > { %v506_v51 = vpop.permute.xlu1 %505  ;;  %v501_v52 = vpop.permute.xlu0 %500 }
  0xaa   : > { %v516_v7 = vpop.permute.xlu1 %515  ;;  %v511_v8 = vpop.permute.xlu0 %510 }
  0xec   : > { %v824_v45 = vpop.f32.mrf.mxu0  ;;  %v832_v46 = vpop.f32.mrf.mxu1 }
  0xed   : > { %v520_v53 = vmul.f32 %v824_v45, %v451_v33  ;;  %v528_v54 = vmul.f32 %v832_v46, %v491_v44 }
  0xee   : > { %v359_v47 = vpop.f32.mrf.mxu0  ;;  %v391_v48 = vpop.f32.mrf.mxu1 }
  0xef   : > { %v518_v57 = vmul.f32 %v441_v34, %v359_v47  ;;  %v526_v58 = vmul.f32 %v481_v42, %v391_v48 }
  0xf0   : > { %v825_v49 = vpop.f32.mrf.mxu0  ;;  %v833_v50 = vpop.f32.mrf.mxu1 }
  0xf1   : > { %v521_v55 = vmul.f32 %v825_v49, %v456_v35  ;;  %v529_v56 = vmul.f32 %v833_v50, %v496_v43 }
  0xf2   : > { %v362_v59 = vpop.f32.mrf.mxu0  ;;  %v394_v60 = vpop.f32.mrf.mxu1 }
  0xf3   : > { %v751_v61 = vpack.c.bf16 %v521_v55, %v520_v53  ;;  %v771_v62 = vpack.c.bf16 %v529_v56, %v528_v54  ;;  %v519_v63 = vmul.f32 %v446_v36, %v362_v59  ;;  %v527_v0 = vmul.f32 %v486_v41, %v394_v60 }
  0xf4   : > { %v828_v1 = vpop.f32.mrf.mxu0  ;;  %v836_v2 = vpop.f32.mrf.mxu1 }
  0xf5   : > { %783 = vst [vmem:[%s987_s15 + $0x8] sm:$0xff] %v751_v61   ;;  %787 = vst [vmem:[%s987_s15 + $0x28] sm:$0xff] %v771_v62   ;;  %v746_v3 = vpack.c.bf16 %v519_v63, %v518_v57  ;;  %v766_v4 = vpack.c.bf16 %v527_v0, %v526_v58  ;;  %v524_v11 = vmul.f32 %v828_v1, %v471_v40 }
  0xf6   : > { %v375_v5 = vpop.f32.mrf.mxu0  ;;  %v407_v6 = vpop.f32.mrf.mxu1  ;;  %v532_v12 = vmul.f32 %v836_v2, %v511_v8 }
  0xf7   : > { %747 = vst [vmem:[%s987_s15] sm:$0xff] %v746_v3   ;;  %786 = vst [vmem:[%s987_s15 + $0x20] sm:$0xff] %v766_v4   ;;  %v522_v15 = vmul.f32 %v461_v38, %v375_v5  ;;  %v530_v16 = vmul.f32 %v501_v52, %v407_v6 }
  0xf8   : > { %v829_v9 = vpop.f32.mrf.mxu0  ;;  %v837_v10 = vpop.f32.mrf.mxu1 }
  0xf9   : > { %v525_v13 = vmul.f32 %v829_v9, %v476_v39  ;;  %v533_v14 = vmul.f32 %v837_v10, %v516_v7 }
  0xfa   : > { %v378_v17 = vpop.f32.mrf.mxu0  ;;  %v410_v18 = vpop.f32.mrf.mxu1 }
  0xfb   : > { %v761_v19 = vpack.c.bf16 %v525_v13, %v524_v11  ;;  %v781_v20 = vpack.c.bf16 %v533_v14, %v532_v12  ;;  %v523_v21 = vmul.f32 %v466_v37, %v378_v17  ;;  %v531_v22 = vmul.f32 %v506_v51, %v410_v18 }
  0xfd   : > { %785 = vst [vmem:[%s987_s15 + $0x18] sm:$0xff] %v761_v19   ;;  %789 = vst [vmem:[%s987_s15 + $0x38] sm:$0xff] %v781_v20   ;;  %v756_v23 = vpack.c.bf16 %v523_v21, %v522_v15  ;;  %v776_v24 = vpack.c.bf16 %v531_v22, %v530_v16 }
  0xff   : > { %784 = vst [vmem:[%s987_s15 + $0x10] sm:$0xff] %v756_v23   ;;  %788 = vst [vmem:[%s987_s15 + $0x30] sm:$0xff] %v776_v24  }
 0x100 PF: > { %s13_s12 = sadd.s32 1, %s887_s12  }
 0x101   : > { %p10_p4 = scmp.ge.s32.totalorder %s13_s12, 5  }
 0x103   :  { %12 = sbr.rel (!%p10_p4) target bundleno = 1 (0x1), region = 65 }

// kernel: gcn_forward.7
= control target key start
LH: loop header
LB: loop body
LE: loop exit
PB: predicated region body
PF: predicated region fallthrough
CT: control target
= control target key end

     0   :  { %9 = vsyncpa [#allocation3], 0  ;;  %s2402_s0 = inlined_call_operand.vmem [shape: bf16[512,384], index: 0, kind: input, shape index: {}]   ;;  %s2403_s1 = inlined_call_operand.vmem [shape: bf16[384,128], index: 1, kind: input, shape index: {}]   ;;  %s2404_s2 = inlined_call_operand.vmem [shape: f32[512,1], index: 2, kind: input, shape index: {}]   ;;  %s2405_s3 = inlined_call_operand.vmem [shape: f32[1,128], index: 3, kind: input, shape index: {}]   ;;  %s2406_s4 = inlined_call_operand.hbm [shape: f32[512,128], index: 4, kind: output, shape index: {}]  }
   0x1   :  { %11 = vsyncpa [#allocation3 + $0x1], 0  ;;  %s1954_s15 = smov 0   ;;  %s1956_s16 = smov 0  }
   0x2   :  { %s1958_s17 = smov 0   ;;  %s1960_s18 = smov 0  }
   0x3 LB: > { %s1975_s19 = sadd.s32 4294967295, %s1923_s18   ;;  %s1442_s20 = sadd.s32 4294967294, %s1923_s18   ;;  %s1923_s18 = sphi %s1960_s18, %s2412_s18   ;;  %s1919_s17 = sphi %s1958_s17, %s2411_s17   ;;  %s1915_s16 = sphi %s1956_s16, %s2410_s16   ;;  %s1911_s15 = sphi %s1954_s15, %s2409_s15  }
   0x4   : > { %s1979_s21 = sadd.s32 1, %s1923_s18   ;;  %s118_s22 = sadd.s32 1, %s1919_s17 }
   0x5   : > { %s115_s23 = ssub.s32 %s1923_s18, %s1979_s21  ;;  %p128_p0 = scmp.ne.s32.totalorder %s1919_s17, %s1915_s16 }
   0x6   : > { %p116_p1 = scmp.eq.s32.totalorder %s115_s23, 0  ;;  %p129_p2 = scmp.eq.s32.totalorder %s1975_s19, 1 }
   0x7   : > { %p134_p3 = scmp.ne.s32.totalorder %s1915_s16, %s1911_s15  ;;  %p135_p4 = scmp.eq.s32.totalorder %s1442_s20, 1 }
   0x8   : > { %s1990_s24 = scalar_select %p116_p1, %s1919_s17, %s118_s22  }
   0x9   : > { %p1992_p5 = por %p129_p2, %p128_p0  ;;  %p1996_p6 = por %p135_p4, %p134_p3 }
   0xa   : > { %p1445_p7 = scmp.ge.s32.totalorder %s1923_s18, 1  ;;  %p178_p8 = scmp.lt.s32.totalorder %s1923_s18, 3 }
   0xc   : > { %p179_p9 = pnand %p1445_p7, %p178_p8 }
   0xd   : > { %s1447_s29 = sshll.u32 (!%p179_p9), %s1975_s19, 5  ;;  %s1529_s20 = sshll.u32 (!%p179_p9), %s1975_s19, 12 }
   0xe   : > { %182 = sbr.rel (%p179_p9) target bundleno = 361 (0x169), region = 36  ;;  %p211_p10 = scmp.lt.s32.totalorder (!%p179_p9), %s1447_s29, 63 }
   0xf   : > { %s1926_s30 = smov (!%p179_p9), [#allocation2]  }
  0x10   : > { %s1867_s5 = sshll.u32 (!%p179_p9), %s1926_s30, 4  ;;  %s1868_s5 = int_to_ptr.vmem [resolvable:$false] %s1867_s5 }
  0x11   : > { %s1869_s6 = scalar_lea.vmem (!%p179_p9), %s1868_s5, 8192 }
  0x13   : > { %v1775_v0 = vld [vmem:[%s2403_s1 + $0x78] sm:$0xff]   ;;  %v1777_v2 = vld [vmem:[%s2403_s1 + $0x70] sm:$0xff]   ;;  %v1779_v4 = vld [vmem:[%s2403_s1 + $0x68] sm:$0xff]   ;;  %v1925_v5 = vmov 0   ;;  %s2414_s29 = smov (!%p211_p10, %s1447_s29), 63 }
  0x14   : > { %v1776_v1 = vld [vmem:[%s2403_s1 + $0x38] sm:$0xff]   ;;  %1530 = vmatprep.subr.bf16.mxu0 %v1775_v0  ;;  %1714 = vmatprep.subr.bf16.mxu1 %v1775_v0  ;;  %v1778_v3 = vld [vmem:[%s2403_s1 + $0x30] sm:$0xff]   ;;  %v1780_v6 = vld [vmem:[%s2403_s1 + $0x28] sm:$0xff]   ;;  %s1730_s22 = smul.u32 12, %s2414_s29  ;;  %s1450_s11 = sshll.u32 %s2414_s29, 3 }
  0x15   : > { %1531 = vmatpush3.bf16.msra.mxu0 %v1776_v1  ;;  %1722 = vmatpush3.bf16.msra.mxu1 %v1776_v1  ;;  %v1781_v7 = vld [vmem:[%s2403_s1 + $0x60] sm:$0xff]   ;;  %v1783_v9 = vld [vmem:[%s2403_s1 + $0x58] sm:$0xff]   ;;  %v1785_v11 = vld [vmem:[%s2403_s1 + $0x50] sm:$0xff]   ;;  %s2083_s27 = scalar_lea.vmem %s2404_s2, %s1450_s11  ;;  %s2353_s29 = scalar_lea.hbm %s2406_s4, %s1529_s20 }
  0x16   : > { %1532 = vmatprep.subr.bf16.mxu0 %v1777_v2  ;;  %1715 = vmatprep.subr.bf16.mxu1 %v1777_v2  ;;  %v1782_v8 = vld [vmem:[%s2403_s1 + $0x20] sm:$0xff]   ;;  %s2036_s7 = scalar_lea.vmem %s2402_s0, %s1730_s22  ;;  %v1784_v10 = vld [vmem:[%s2403_s1 + $0x18] sm:$0xff]   ;;  %v1786_v14 = vld [vmem:[%s2403_s1 + $0x10] sm:$0xff]  }
  0x17   : > { %1774 = vset.pattern.permute.xlu1 %v1925_v5  ;;  %1773 = vset.pattern.permute.xlu0 %v1925_v5  ;;  %v1793_v12 = vld [vmem:[%s2036_s7 + $0x4] ss:$12 sps:$4 sm:$0xff]   ;;  %v1787_v15 = vld [vmem:[%s2403_s1 + $0x48] sm:$0xff]   ;;  %v1797_v19 = vld [vmem:[%s2403_s1 + $0xb8] sm:$0xff]  }
  0x18   : > { %v1796_v13 = vld [vmem:[%s2036_s7 + $0x124] ss:$12 sps:$4 sm:$0xff]   ;;  %769 = vmatprep.mubr.bf16.mxu0 %v1793_v12  ;;  %v1788_v16 = vld [vmem:[%s2403_s1 + $0x8] sm:$0xff]   ;;  %v1807_v29 = vld [vmem:[%s2036_s7 + $0x34] ss:$12 sps:$4 sm:$0xff]  }
  0x19   : > { %1533 = vmatpush3.bf16.msra.mxu0 %v1778_v3  ;;  %1723 = vmatpush3.bf16.msra.mxu1 %v1778_v3  ;;  %v1789_v17 = vld [vmem:[%s2403_s1 + $0x40] sm:$0xff]   ;;  %v1799_v22 = vld [vmem:[%s2036_s7 + $0x1c] ss:$12 sps:$4 sm:$0xff]   ;;  %v1798_v23 = vld [vmem:[%s2403_s1 + $0xb0] sm:$0xff]  }
  0x1a   : > { %1534 = vmatprep.subr.bf16.mxu0 %v1779_v4  ;;  %1716 = vmatprep.subr.bf16.mxu1 %v1779_v4  ;;  %v1790_v18 = vld [vmem:[%s2403_s1] sm:$0xff]   ;;  %v1801_v24 = vld [vmem:[%s2036_s7 + $0x13c] ss:$12 sps:$4 sm:$0xff]   ;;  %v1061_v31 = vld [vmem:[%s2083_s27 + $0x10] sm:$0xff] }
  0x1b   : > { %865 = vmatprep.mubr.bf16.mxu1 %v1796_v13  ;;  %v1791_v20 = vld [vmem:[%s2036_s7] ss:$12 sps:$4 sm:$0xff]   ;;  %v1803_v25 = vld [vmem:[%s2036_s7 + $0x18] ss:$12 sps:$4 sm:$0xff]   ;;  %v1811_v34 = vld [vmem:[%s2036_s7 + $0x30] ss:$12 sps:$4 sm:$0xff]   ;;  %1103 = vperm.xlu1 %1774, %v1061_v31  }
  0x1c   : > { %v1794_v21 = vld [vmem:[%s2036_s7 + $0x120] ss:$12 sps:$4 sm:$0xff]   ;;  %v1804_v27 = vld [vmem:[%s2036_s7 + $0x138] ss:$12 sps:$4 sm:$0xff]   ;;  %v1812_v35 = vld [vmem:[%s2036_s7 + $0x150] ss:$12 sps:$4 sm:$0xff]  }
  0x1d   : > { %1535 = vmatpush3.bf16.msra.mxu0 %v1780_v6  ;;  %1724 = vmatpush3.bf16.msra.mxu1 %v1780_v6  ;;  %v1805_v26 = vld [vmem:[%s2403_s1 + $0xa8] sm:$0xff]   ;;  %v1806_v28 = vld [vmem:[%s2403_s1 + $0xa0] sm:$0xff]   ;;  %v1813_v33 = vld [vmem:[%s2403_s1 + $0x98] sm:$0xff]  }
  0x1e   : > { %1536 = vmatprep.subr.bf16.mxu0 %v1781_v7  ;;  %1717 = vmatprep.subr.bf16.mxu1 %v1781_v7  ;;  %v1809_v30 = vld [vmem:[%s2036_s7 + $0x154] ss:$12 sps:$4 sm:$0xff]   ;;  %v1062_v36 = vld [vmem:[%s2083_s27 + $0x18] sm:$0xff]  ;;  %v1060_v37 = vld [vmem:[%s2083_s27 + $0x8] sm:$0xff] }
  0x1f   : > { %v1059_v32 = vld [vmem:[%s2083_s27] sm:$0xff]  ;;  %v1815_v38 = vld [vmem:[%s2036_s7 + $0x4c] ss:$12 sps:$4 sm:$0xff]   ;;  %v1814_v39 = vld [vmem:[%s2403_s1 + $0x90] sm:$0xff]   ;;  %1108 = vperm.xlu1 %1774, %v1062_v36  }
  0x20   : > { %1093 = vperm.xlu0 %1773, %v1059_v32   ;;  %v1817_v40 = vld [vmem:[%s2036_s7 + $0x16c] ss:$12 sps:$4 sm:$0xff]   ;;  %v1063_v42 = vld [vmem:[%s2083_s27 + $0x20] sm:$0xff]  ;;  %v1819_v44 = vld [vmem:[%s2036_s7 + $0x48] ss:$12 sps:$4 sm:$0xff]  }
  0x21   : > { %1537 = vmatpush3.bf16.msra.mxu0 %v1782_v8  ;;  %1725 = vmatpush3.bf16.msra.mxu1 %v1782_v8  ;;  %v1064_v41 = vld [vmem:[%s2083_s27 + $0x28] sm:$0xff]  ;;  %v1066_v46 = vld [vmem:[%s2083_s27 + $0x38] sm:$0xff]  ;;  %v1065_v47 = vld [vmem:[%s2083_s27 + $0x30] sm:$0xff] }
  0x22   : > { %1538 = vmatprep.subr.bf16.mxu0 %v1783_v9  ;;  %1718 = vmatprep.subr.bf16.mxu1 %v1783_v9  ;;  %v1821_v43 = vld [vmem:[%s2403_s1 + $0x88] sm:$0xff]   ;;  %v1822_v48 = vld [vmem:[%s2403_s1 + $0x80] sm:$0xff]   ;;  %v1070_v56 = vld [vmem:[%s2083_s27 + $0x58] sm:$0xff] }
  0x23   : > { %v1820_v45 = vld [vmem:[%s2036_s7 + $0x168] ss:$12 sps:$4 sm:$0xff]   ;;  %1118 = vperm.xlu1 %1774, %v1064_v41   ;;  %v1823_v49 = vld [vmem:[%s2036_s7 + $0x64] ss:$12 sps:$4 sm:$0xff]   ;;  %v1826_v53 = vld [vmem:[%s2036_s7 + $0x60] ss:$12 sps:$4 sm:$0xff]  }
  0x24   : > { %1098 = vperm.xlu0 %1773, %v1060_v37   ;;  %v1825_v50 = vld [vmem:[%s2036_s7 + $0x8] ss:$12 sps:$4 sm:$0xff]   ;;  %v1067_v52 = vld [vmem:[%s2083_s27 + $0x40] sm:$0xff]  ;;  %v1832_v62 = vld [vmem:[%s2036_s7 + $0x50] ss:$12 sps:$4 sm:$0xff]  }
  0x25   : > { %1539 = vmatpush3.bf16.msra.mxu0 %v1784_v10  ;;  %1726 = vmatpush3.bf16.msra.mxu1 %v1784_v10  ;;  %v1068_v51 = vld [vmem:[%s2083_s27 + $0x48] sm:$0xff]  ;;  %v1069_v57 = vld [vmem:[%s2083_s27 + $0x50] sm:$0xff]  ;;  %v1830_v58 = vld [vmem:[%s2036_s7 + $0x38] ss:$12 sps:$4 sm:$0xff]  }
  0x26   : > { %1540 = vmatprep.subr.bf16.mxu0 %v1785_v11  ;;  %1719 = vmatprep.subr.bf16.mxu1 %v1785_v11  ;;  %v1827_v54 = vld [vmem:[%s2036_s7 + $0x20] ss:$12 sps:$4 sm:$0xff]   ;;  %v1828_v55 = vld [vmem:[%s2036_s7 + $0x7c] ss:$12 sps:$4 sm:$0xff]   ;;  %v1831_v61 = vld [vmem:[%s2036_s7 + $0x78] ss:$12 sps:$4 sm:$0xff]  }
  0x27   : > { %1128 = vperm.xlu1 %1774, %v1066_v46   ;;  %v1072_v59 = vld [vmem:[%s2083_s27 + $0x68] sm:$0xff]  ;;  %v1071_v60 = vld [vmem:[%s2083_s27 + $0x60] sm:$0xff]  ;;  %v1074_v63 = vld [vmem:[%s2083_s27 + $0x78] sm:$0xff] }
  0x28   : > { %1113 = vperm.xlu0 %1773, %v1063_v42   ;;  %v1073_v0 = vld [vmem:[%s2083_s27 + $0x70] sm:$0xff]  ;;  %v1076_v3 = vld [vmem:[%s2083_s27 + $0x88] sm:$0xff]  ;;  %v1075_v4 = vld [vmem:[%s2083_s27 + $0x80] sm:$0xff] }
  0x29   : > { %1541 = vmatpush3.bf16.msra.mxu0 %v1786_v14  ;;  %1727 = vmatpush3.bf16.msra.mxu1 %v1786_v14  ;;  %v1833_v1 = vld [vmem:[%s2036_s7 + $0x94] ss:$12 sps:$4 sm:$0xff]   ;;  %v1836_v5 = vld [vmem:[%s2036_s7 + $0x90] ss:$12 sps:$4 sm:$0xff]   ;;  %v1838_v9 = vld [vmem:[%s2036_s7 + $0xac] ss:$12 sps:$4 sm:$0xff]  }
  0x2a   : > { %1542 = vmatprep.subr.bf16.mxu0 %v1787_v15  ;;  %1720 = vmatprep.subr.bf16.mxu1 %v1787_v15  ;;  %v1835_v2 = vld [vmem:[%s2036_s7 + $0x68] ss:$12 sps:$4 sm:$0xff]   ;;  %v1837_v6 = vld [vmem:[%s2036_s7 + $0x80] ss:$12 sps:$4 sm:$0xff]   ;;  %v1078_v7 = vld [vmem:[%s2083_s27 + $0x98] sm:$0xff] }
  0x2b   : > { %1138 = vperm.xlu1 %1774, %v1068_v51   ;;  %v1077_v8 = vld [vmem:[%s2083_s27 + $0x90] sm:$0xff]  ;;  %v1840_v10 = vld [vmem:[%s2036_s7 + $0x98] ss:$12 sps:$4 sm:$0xff]   ;;  %v1080_v11 = vld [vmem:[%s2083_s27 + $0xa8] sm:$0xff] }
  0x2c   : > { %1123 = vperm.xlu0 %1773, %v1065_v47   ;;  %v1079_v12 = vld [vmem:[%s2083_s27 + $0xa0] sm:$0xff]  ;;  %v1841_v13 = vld [vmem:[%s2036_s7 + $0xa8] ss:$12 sps:$4 sm:$0xff]   ;;  %v1842_v14 = vld [vmem:[%s2036_s7 + $0xb0] ss:$12 sps:$4 sm:$0xff]  }
  0x2d   : > { %1543 = vmatpush3.bf16.msra.mxu0 %v1788_v16  ;;  %1728 = vmatpush3.bf16.msra.mxu1 %v1788_v16  ;;  %v1082_v15 = vld [vmem:[%s2083_s27 + $0xb8] sm:$0xff]  ;;  %v1081_v16 = vld [vmem:[%s2083_s27 + $0xb0] sm:$0xff]  ;;  %v1857_v36 = vld [vmem:[%s2036_s7 + $0x140] ss:$12 sps:$4 sm:$0xff]  }
  0x2e   : > { %1544 = vmatprep.subr.bf16.mxu0 %v1789_v17  ;;  %1721 = vmatprep.subr.bf16.mxu1 %v1789_v17  ;;  %v1843_v17 = vld [vmem:[%s2036_s7 + $0xc4] ss:$12 sps:$4 sm:$0xff]   ;;  %v1090_v31 = vld [vmem:[%s2083_s27 + $0xf8] sm:$0xff] }
  0x2f   : > { %1148 = vperm.xlu1 %1774, %v1070_v56   ;;  %v1089_v32 = vld [vmem:[%s2083_s27 + $0xf0] sm:$0xff]  ;;  %v1858_v37 = vld [vmem:[%s2036_s7 + $0x10c] ss:$12 sps:$4 sm:$0xff]  }
  0x30   : > { %1133 = vperm.xlu0 %1773, %v1067_v52  }
  0x31   : > { %1545 = vmatpush3.bf16.msra.mxu0 %v1790_v18  ;;  %1729 = vmatpush3.bf16.msra.mxu1 %v1790_v18  ;;  %v1845_v18 = vld [vmem:[%s2036_s7 + $0xc8] ss:$12 sps:$4 sm:$0xff]  }
  0x32   : > { %1666 = vmatprep.subr.bf16.mxu1 %v1797_v19 }
  0x33   : > { %1158 = vperm.xlu1 %1774, %v1072_v59  }
  0x34   : > { %770 = vmatmul.mubr.bf16.vlgmr.msra.gmra.mxu0 %v1791_v20  ;;  %866 = vmatmul.mubr.bf16.vlgmr.msra.gmra.mxu1 %v1794_v21  ;;  %v1083_v20 = vld [vmem:[%s2083_s27 + $0xc0] sm:$0xff] }
  0x35   : > { %1667 = vmatpush3.bf16.msra.mxu1 %v1797_v19  ;;  %777 = vmatprep.mubr.bf16.mxu0 %v1799_v22  ;;  %v1084_v19 = vld [vmem:[%s2083_s27 + $0xc8] sm:$0xff] }
  0x36   : > { %1668 = vmatprep.subr.bf16.mxu1 %v1798_v23  ;;  %873 = vmatprep.mubr.bf16.mxu1 %v1801_v24  ;;  %v1846_v21 = vld [vmem:[%s2036_s7 + $0xc0] ss:$12 sps:$4 sm:$0xff]   ;;  %v1085_v24 = vld [vmem:[%s2083_s27 + $0xd0] sm:$0xff] }
  0x37   : > { %1143 = vperm.xlu0 %1773, %v1069_v57   ;;  %1168 = vperm.xlu1 %1774, %v1074_v63   ;;  %v1847_v22 = vld [vmem:[%s2036_s7 + $0xe0] ss:$12 sps:$4 sm:$0xff]  }
  0x39   : > { %1669 = vmatpush3.bf16.msra.mxu1 %v1798_v23  ;;  %v1086_v23 = vld [vmem:[%s2083_s27 + $0xd8] sm:$0xff] }
  0x3a   : > { %1670 = vmatprep.subr.bf16.mxu1 %v1805_v26 }
  0x3b   : > { %1153 = vperm.xlu0 %1773, %v1071_v60   ;;  %1178 = vperm.xlu1 %1774, %v1076_v3  }
  0x3c   : > { %778 = vmatmul.mubr.bf16.gmra.mxu0 %v1803_v25  ;;  %874 = vmatmul.mubr.bf16.gmra.mxu1 %v1804_v27  ;;  %v1848_v25 = vld [vmem:[%s2036_s7 + $0xdc] ss:$12 sps:$4 sm:$0xff]  }
  0x3d   : > { %1671 = vmatpush3.bf16.msra.mxu1 %v1805_v26  ;;  %785 = vmatprep.mubr.bf16.mxu0 %v1807_v29  ;;  %v1850_v26 = vld [vmem:[%s2036_s7 + $0xf8] ss:$12 sps:$4 sm:$0xff]   ;;  %v1088_v27 = vld [vmem:[%s2083_s27 + $0xe8] sm:$0xff] }
  0x3e   : > { %1672 = vmatprep.subr.bf16.mxu1 %v1806_v28  ;;  %881 = vmatprep.mubr.bf16.mxu1 %v1809_v30  ;;  %v1851_v29 = vld [vmem:[%s2036_s7 + $0xd8] ss:$12 sps:$4 sm:$0xff]   ;;  %v1852_v30 = vld [vmem:[%s2036_s7 + $0x110] ss:$12 sps:$4 sm:$0xff]  }
  0x3f   : > { %1163 = vperm.xlu0 %1773, %v1073_v0   ;;  %1188 = vperm.xlu1 %1774, %v1078_v7  }
  0x41   : > { %1673 = vmatpush3.bf16.msra.mxu1 %v1806_v28  ;;  %v1087_v28 = vld [vmem:[%s2083_s27 + $0xe0] sm:$0xff] }
  0x42   : > { %1674 = vmatprep.subr.bf16.mxu1 %v1813_v33 }
  0x43   : > { %1173 = vperm.xlu0 %1773, %v1075_v4   ;;  %1198 = vperm.xlu1 %1774, %v1080_v11  }
  0x44   : > { %786 = vmatmul.mubr.bf16.gmra.mxu0 %v1811_v34  ;;  %882 = vmatmul.mubr.bf16.gmra.mxu1 %v1812_v35  ;;  %v1855_v34 = vld [vmem:[%s2036_s7 + $0x128] ss:$12 sps:$4 sm:$0xff]   ;;  %v1856_v35 = vld [vmem:[%s2036_s7 + $0xf0] ss:$12 sps:$4 sm:$0xff]  }
  0x45   : > { %1675 = vmatpush3.bf16.msra.mxu1 %v1813_v33  ;;  %793 = vmatprep.mubr.bf16.mxu0 %v1815_v38  ;;  %v1853_v33 = vld [vmem:[%s2036_s7 + $0xf4] ss:$12 sps:$4 sm:$0xff]   ;;  %v1860_v38 = vld [vmem:[%s2036_s7 + $0x158] ss:$12 sps:$4 sm:$0xff]  }
  0x46   : > { %1676 = vmatprep.subr.bf16.mxu1 %v1814_v39  ;;  %889 = vmatprep.mubr.bf16.mxu1 %v1817_v40  ;;  %v1862_v40 = vld [vmem:[%s2036_s7 + $0x170] ss:$12 sps:$4 sm:$0xff]  }
  0x47   : > { %1183 = vperm.xlu0 %1773, %v1077_v8   ;;  %1208 = vperm.xlu1 %1774, %v1082_v15  }
  0x49   : > { %1677 = vmatpush3.bf16.msra.mxu1 %v1814_v39  ;;  %v1861_v39 = vld [vmem:[%s2036_s7 + $0x108] ss:$12 sps:$4 sm:$0xff]   ;;  %s207_s7 = sand.u32 1, %s1915_s16  }
  0x4a   : > { %1678 = vmatprep.subr.bf16.mxu1 %v1821_v43  ;;  %s1446_s11 = sshll.u32 %s207_s7, 8  ;;  %s2362_s19 = scalar_lea.sflag [#allocation3], %s207_s7 }
  0x4b   : > { %1193 = vperm.xlu0 %1773, %v1079_v12   ;;  %1218 = vperm.xlu1 %1774, %v1084_v19   ;;  %s2227_s14 = scalar_lea.vmem [#allocation2], %s1446_s11 }
  0x4c   : > { %794 = vmatmul.mubr.bf16.gmra.mxu0 %v1819_v44  ;;  %890 = vmatmul.mubr.bf16.gmra.mxu1 %v1820_v45  ;;  %s1368_s22 = sshll.u32 %s2227_s14, 4  ;;  %s2355_s22 = int_to_ptr.vmem [resolvable:$true] %s1368_s22 }
  0x4d   : > { %1679 = vmatpush3.bf16.msra.mxu1 %v1821_v43  ;;  %801 = vmatprep.mubr.bf16.mxu0 %v1823_v49  ;;  %s1863_s28 = scalar_lea.vmem %s2355_s22, 4096  ;;  %p1870_p0 = scmp.lt.s32.totalorder %s2355_s22, %s1868_s5 }
  0x4e   : > { %1680 = vmatprep.subr.bf16.mxu1 %v1822_v48  ;;  %1682 = vmatprep.mubr.bf16.mxu1 %v1825_v50  ;;  %p1864_p11 = scmp.ne.s32.totalorder %s2355_s22, %s1863_s28  ;;  %p1871_p1 = scmp.lt.s32.totalorder %s1869_s6, %s1863_s28 }
  0x4f   : > { %1203 = vperm.xlu0 %1773, %v1081_v16   ;;  %1228 = vperm.xlu1 %1774, %v1086_v23  }
  0x50   : > { %p1865_p12 = pnand %p1864_p11, %p1992_p5  ;;  %p1872_p2 = por %p1871_p1, %p1870_p0 }
  0x51   : > { %1681 = vmatpush3.bf16.msra.mxu1 %v1822_v48 }
  0x52   : > { %p1866_p13 = pneg %p1865_p12 }
  0x53   : > { %1213 = vperm.xlu0 %1773, %v1083_v20   ;;  %1238 = vperm.xlu1 %1774, %v1088_v27  }
  0x54   : > { %802 = vmatmul.mubr.bf16.gmra.mxu0 %v1826_v53  ;;  %1683 = vmatmul.mubr.bf16.vlgmr.msra.gmra.mxu1 %v1827_v54  ;;  %p1873_p3 = pnand %p1872_p2, %p1866_p13 }
  0x55   : > { %809 = vmatprep.mubr.bf16.mxu0 %v1828_v55  ;;  %1686 = vmatprep.mubr.bf16.mxu1 %v1830_v58 }
  0x57   : > { %1223 = vperm.xlu0 %1773, %v1085_v24   ;;  %1248 = vperm.xlu1 %1774, %v1090_v31  }
  0x5b   : > { %1233 = vperm.xlu0 %1773, %v1087_v28  }
  0x5c   : > { %810 = vmatmul.mubr.bf16.gmra.mxu0 %v1831_v61  ;;  %1687 = vmatmul.mubr.bf16.gmra.mxu1 %v1832_v62 }
  0x5d   : > { %817 = vmatprep.mubr.bf16.mxu0 %v1833_v1  ;;  %1690 = vmatprep.mubr.bf16.mxu1 %v1835_v2 }
  0x5f   : > { %1243 = vperm.xlu0 %1773, %v1089_v32   ;;  %v2217_v32 = vld [vmem:[%s2405_s3] ss:$0 sm:$0xff] }
  0x64   : > { %818 = vmatmul.mubr.bf16.gmra.mxu0 %v1836_v5  ;;  %1691 = vmatmul.mubr.bf16.gmra.mxu1 %v1837_v6 }
  0x65   : > { %825 = vmatprep.mubr.bf16.mxu0 %v1838_v9  ;;  %1694 = vmatprep.mubr.bf16.mxu1 %v1840_v10 }
  0x6c   : > { %826 = vmatmul.mubr.bf16.gmra.mxu0 %v1841_v13  ;;  %1695 = vmatmul.mubr.bf16.gmra.mxu1 %v1842_v14 }
  0x6d   : > { %833 = vmatprep.mubr.bf16.mxu0 %v1843_v17  ;;  %1698 = vmatprep.mubr.bf16.mxu1 %v1845_v18 }
  0x74   : > { %834 = vmatmul.mubr.bf16.gmra.mxu0 %v1846_v21  ;;  %1699 = vmatmul.mubr.bf16.gmra.mxu1 %v1847_v22 }
  0x75   : > { %841 = vmatprep.mubr.bf16.mxu0 %v1848_v25  ;;  %1702 = vmatprep.mubr.bf16.mxu1 %v1850_v26 }
  0x7c   : > { %842 = vmatmul.mubr.bf16.gmra.mxu0 %v1851_v29  ;;  %1703 = vmatmul.mubr.bf16.gmra.mxu1 %v1852_v30 }
  0x7d   : > { %849 = vmatprep.mubr.bf16.mxu0 %v1853_v33  ;;  %1706 = vmatprep.mubr.bf16.mxu1 %v1855_v34 }
  0x84   : > { %850 = vmatmul.mubr.bf16.gmra.mxu0 %v1856_v35  ;;  %1707 = vmatmul.mubr.bf16.gmra.mxu1 %v1857_v36 }
  0x85   : > { %857 = vmatprep.mubr.bf16.mxu0 %v1858_v37  ;;  %1710 = vmatprep.mubr.bf16.mxu1 %v1860_v38 }
  0x8c   : > { %858 = vmatmul.mubr.bf16.gmra.mxu0 %v1861_v39  ;;  %1711 = vmatmul.mubr.bf16.gmra.mxu1 %v1862_v40 }
  0x96   : > { %v1104_v46 = vpop.permute.xlu1 %1103 }
  0x9a   : > { %v1109_v56 = vpop.permute.xlu1 %1108 }
  0x9b   : > { %v2169_v41 = vpop.permute.xlu0 %1093 }
  0x9e   : > { %v2181_v1 = vpop.permute.xlu1 %1118 }
  0x9f   : > { %v2173_v50 = vpop.permute.xlu0 %1098 }
  0xa2   : > { %v2191_v11 = vpop.permute.xlu1 %1128 }
  0xa3   : > { %v2177_v59 = vpop.permute.xlu0 %1113 }
  0xa6   : > { %v2201_v20 = vpop.permute.xlu1 %1138 }
  0xa7   : > { %v2185_v5 = vpop.permute.xlu0 %1123 }
  0xaa   : > { %v2210_v29 = vpop.permute.xlu1 %1148 }
  0xab   : > { %v2193_v14 = vpop.permute.xlu0 %1133 }
  0xb2   : > { %v2205_v23 = vpop.permute.xlu0 %1143 }
  0xb6   : > { %v2219_v35 = vpop.permute.xlu0 %1153 }
  0xf4   : > { %v1546_v42 = vpop.f32.mrf.mxu0  ;;  %v1618_v43 = vpop.f32.mrf.mxu1 }
  0xf6   : > { %v1547_v44 = vpop.f32.mrf.mxu0  ;;  %v1619_v45 = vpop.f32.mrf.mxu1 }
  0xf7   : > { %v2171_v47 = vadd.f32 %v1619_v45, %v1618_v43  ;;  %v1548_v30 = vadd.f32 %v1547_v44, %v1546_v42 }
  0xf8   : > { %v1549_v48 = vpop.f32.mrf.mxu0  ;;  %v1621_v49 = vpop.f32.mrf.mxu1 }
  0xfa   : > { %v1550_v51 = vpop.f32.mrf.mxu0  ;;  %v1622_v52 = vpop.f32.mrf.mxu1 }
  0xfb   : > { %v2175_v53 = vadd.f32 %v1622_v52, %v1621_v49  ;;  %v1551_v43 = vadd.f32 %v1550_v51, %v1549_v48 }
  0xfc   : > { %v1552_v54 = vpop.f32.mrf.mxu0  ;;  %v1624_v55 = vpop.f32.mrf.mxu1 }
  0xfe   : > { %v1553_v57 = vpop.f32.mrf.mxu0  ;;  %v1625_v58 = vpop.f32.mrf.mxu1 }
  0xff   : > { %v2179_v60 = vadd.f32 %v1625_v58, %v1624_v55  ;;  %v1554_v26 = vadd.f32 %v1553_v57, %v1552_v54  ;;  %v2225_v54 = vpop.permute.xlu1 %1158 }
 0x100   : > { %v1555_v61 = vpop.f32.mrf.mxu0  ;;  %v1627_v62 = vpop.f32.mrf.mxu1 }
 0x102   : > { %v1556_v63 = vpop.f32.mrf.mxu0  ;;  %v1628_v0 = vpop.f32.mrf.mxu1 }
 0x103   : > { %v2183_v2 = vadd.f32 %v1628_v0, %v1627_v62  ;;  %v1557_v36 = vadd.f32 %v1556_v63, %v1555_v61  ;;  %v2231_v61 = vpop.permute.xlu0 %1163 }
 0x104   : > { %v1558_v3 = vpop.f32.mrf.mxu0  ;;  %v1630_v4 = vpop.f32.mrf.mxu1 }
 0x106   : > { %v1559_v6 = vpop.f32.mrf.mxu0  ;;  %v1631_v7 = vpop.f32.mrf.mxu1 }
 0x107   : > { %v2187_v8 = vadd.f32 %v1631_v7, %v1630_v4 }
 0x108   : > { %v2189_v9 = vpop.f32.mrf.mxu0  ;;  %v1633_v10 = vpop.f32.mrf.mxu1 }
 0x10a   : > { %v1562_v12 = vpop.f32.mrf.mxu0  ;;  %v1634_v13 = vpop.f32.mrf.mxu1 }
 0x10b   : > { %v2195_v15 = vadd.f32 %v1634_v13, %v1633_v10 }
 0x10c   : > { %v1564_v16 = vpop.f32.mrf.mxu0  ;;  %v2197_v17 = vpop.f32.mrf.mxu1 }
 0x10e   : > { %v1565_v18 = vpop.f32.mrf.mxu0  ;;  %v2199_v19 = vpop.f32.mrf.mxu1 }
 0x10f   : > { %v1566_v55 = vadd.f32 %v1565_v18, %v1564_v16 }
 0x110   : > { %v1567_v21 = vpop.f32.mrf.mxu0  ;;  %v2203_v22 = vpop.f32.mrf.mxu1 }
 0x112   : > { %v1568_v24 = vpop.f32.mrf.mxu0  ;;  %v2207_v25 = vpop.f32.mrf.mxu1 }
 0x113   : > { %v1569_v10 = vadd.f32 %v1568_v24, %v1567_v21 }
 0x114   : > { %v1570_v27 = vpop.f32.mrf.mxu0  ;;  %v1684_v28 = vpop.f32.mrf.mxu1 }
 0x115   : > { %v941_v31 = vadd.f32 %v1684_v28, %v1554_v26 }
 0x116   : > { %v1571_v33 = vpop.f32.mrf.mxu0  ;;  %v932_v34 = vpop.f32.mrf.mxu1 }
 0x117   : > { %v1253_v37 = vmul.f32 %v1104_v46, %v941_v31  ;;  %v933_v38 = vadd.f32 %v1548_v30, %v932_v34  ;;  %v2245_v31 = vpop.permute.xlu0 %1173 }
 0x118   : > { %v2221_v39 = vpop.f32.mrf.mxu0  ;;  %v1685_v40 = vpop.f32.mrf.mxu1 }
 0x119   : > { %v1292_v42 = vadd.f32 %v2217_v32, %v1253_v37  ;;  %v1251_v44 = vmul.f32 %v2169_v41, %v933_v38  ;;  %v944_v45 = vadd.f32 %v1685_v40, %v1557_v36  ;;  %v1560_v41 = vadd.f32 %v1559_v6, %v1558_v3  ;;  %v2239_v3 = vpop.permute.xlu1 %1168 }
 0x11a   : > { %v1574_v49 = vpop.f32.mrf.mxu0  ;;  %v935_v52 = vpop.f32.mrf.mxu1  ;;  %v1563_v6 = vadd.f32 %v1562_v12, %v2189_v9  ;;  %v1572_v38 = vadd.f32 %v1571_v33, %v1570_v27 }
 0x11b   : > { %1324 = vst [vmem:[%s2227_s14 + $0x10] sm:$0xff] %v1292_v42  ;;  %v1290_v46 = vadd.f32 %v2217_v32, %v1251_v44  ;;  %v1254_v57 = vmul.f32 %v1109_v56, %v944_v45  ;;  %v936_v48 = vadd.f32 %v1551_v43, %v935_v52 }
 0x11c   : > { %v1576_v51 = vpop.f32.mrf.mxu0  ;;  %v1688_v58 = vpop.f32.mrf.mxu1 }
 0x11d   : > { %1322 = vst [vmem:[%s2227_s14] sm:$0xff] %v1290_v46  ;;  %v1293_v62 = vadd.f32 %v2217_v32, %v1254_v57  ;;  %v1252_v63 = vmul.f32 %v2173_v50, %v936_v48  ;;  %v957_v0 = vadd.f32 %v1688_v58, %v1566_v55  ;;  %v2253_v45 = vpop.permute.xlu1 %1178  ;;  %v2258_v57 = vpop.permute.xlu0 %1183 }
 0x11e   : > { %v1577_v4 = vpop.f32.mrf.mxu0  ;;  %v948_v7 = vpop.f32.mrf.mxu1 }
 0x11f   : > { %1325 = vst [vmem:[%s2227_s14 + $0x18] sm:$0xff] %v1293_v62  ;;  %v1291_v56 = vadd.f32 %v2217_v32, %v1252_v63  ;;  %v1257_v13 = vmul.f32 %v2185_v5, %v957_v0  ;;  %v949_v16 = vadd.f32 %v1560_v41, %v948_v7  ;;  %v1578_v5 = vadd.f32 %v1577_v4, %v1576_v51 }
 0x120   : > { %v1579_v18 = vpop.f32.mrf.mxu0  ;;  %v1689_v26 = vpop.f32.mrf.mxu1 }
 0x121   : > { %1323 = vst [vmem:[%s2227_s14 + $0x8] sm:$0xff] %v1291_v56  ;;  %v1296_v50 = vadd.f32 %v2217_v32, %v1257_v13  ;;  %v1255_v28 = vmul.f32 %v2177_v59, %v949_v16  ;;  %v960_v21 = vadd.f32 %v1689_v26, %v1569_v10  ;;  %v2267_v10 = vpop.permute.xlu1 %1188  ;;  %v2272_v16 = vpop.permute.xlu0 %1193 }
 0x122   : > { %v1580_v24 = vpop.f32.mrf.mxu0  ;;  %v951_v30 = vpop.f32.mrf.mxu1 }
 0x123   : > { %1328 = vst [vmem:[%s2227_s14 + $0x30] sm:$0xff] %v1296_v50  ;;  %v1294_v34 = vadd.f32 %v2217_v32, %v1255_v28  ;;  %v1258_v36 = vmul.f32 %v2191_v11, %v960_v21  ;;  %v952_v37 = vadd.f32 %v1563_v6, %v951_v30  ;;  %v1581_v52 = vadd.f32 %v1580_v24, %v1579_v18 }
 0x124   : > { %v1582_v9 = vpop.f32.mrf.mxu0  ;;  %v1692_v12 = vpop.f32.mrf.mxu1 }
 0x125   : > { %1326 = vst [vmem:[%s2227_s14 + $0x20] sm:$0xff] %v1294_v34  ;;  %v1297_v59 = vadd.f32 %v2217_v32, %v1258_v36  ;;  %v1256_v40 = vmul.f32 %v2181_v1, %v952_v37  ;;  %v973_v43 = vadd.f32 %v1692_v12, %v1578_v5  ;;  %v1575_v1 = vadd.f32 %v1574_v49, %v2221_v39  ;;  %v2278_v5 = vpop.permute.xlu1 %1198 }
 0x126   : > { %v1583_v42 = vpop.f32.mrf.mxu0  ;;  %v964_v44 = vpop.f32.mrf.mxu1 }
 0x127   : > { %1329 = vst [vmem:[%s2227_s14 + $0x38] sm:$0xff] %v1297_v59  ;;  %v1295_v11 = vadd.f32 %v2217_v32, %v1256_v40  ;;  %v1261_v55 = vmul.f32 %v2205_v23, %v973_v43  ;;  %v965_v46 = vadd.f32 %v1572_v38, %v964_v44  ;;  %v1584_v39 = vadd.f32 %v1583_v42, %v1582_v9  ;;  %v2282_v59 = vpop.permute.xlu0 %1203 }
 0x128   : > { %v1585_v27 = vpop.f32.mrf.mxu0  ;;  %v1693_v33 = vpop.f32.mrf.mxu1 }
 0x129   : > { %1327 = vst [vmem:[%s2227_s14 + $0x28] sm:$0xff] %v1295_v11  ;;  %v1300_v48 = vadd.f32 %v2217_v32, %v1261_v55  ;;  %v1259_v51 = vmul.f32 %v2193_v14, %v965_v46  ;;  %v976_v58 = vadd.f32 %v1693_v33, %v1581_v52 }
 0x12a   : > { %v1586_v41 = vpop.f32.mrf.mxu0  ;;  %v967_v62 = vpop.f32.mrf.mxu1 }
 0x12b   : > { %1332 = vst [vmem:[%s2227_s14 + $0x50] sm:$0xff] %v1300_v48  ;;  %v1298_v23 = vadd.f32 %v2217_v32, %v1259_v51  ;;  %v1262_v63 = vmul.f32 %v2210_v29, %v976_v58  ;;  %v968_v0 = vadd.f32 %v1575_v1, %v967_v62  ;;  %v1587_v28 = vadd.f32 %v1586_v41, %v1585_v27  ;;  %v2290_v27 = vpop.permute.xlu1 %1208  ;;  %v1214_v51 = vpop.permute.xlu0 %1213 }
 0x12c   : > { %v1588_v4 = vpop.f32.mrf.mxu0  ;;  %v1696_v7 = vpop.f32.mrf.mxu1 }
 0x12d   : > { %1330 = vst [vmem:[%s2227_s14 + $0x40] sm:$0xff] %v1298_v23  ;;  %v1301_v49 = vadd.f32 %v2217_v32, %v1262_v63  ;;  %v1260_v14 = vmul.f32 %v2201_v20, %v968_v0 }
 0x12e   : > { %v1589_v56 = vpop.f32.mrf.mxu0  ;;  %v980_v13 = vpop.f32.mrf.mxu1 }
 0x12f   : > { %1333 = vst [vmem:[%s2227_s14 + $0x58] sm:$0xff] %v1301_v49  ;;  %v1299_v18 = vadd.f32 %v2217_v32, %v1260_v14  ;;  %v1590_v29 = vadd.f32 %v1589_v56, %v1588_v4  ;;  %v981_v26 = vadd.f32 %v1584_v39, %v980_v13  ;;  %v1224_v13 = vpop.permute.xlu0 %1223 }
 0x130   : > { %v1591_v6 = vpop.f32.mrf.mxu0  ;;  %v1697_v50 = vpop.f32.mrf.mxu1 }
 0x131   : > { %1331 = vst [vmem:[%s2227_s14 + $0x48] sm:$0xff] %v1299_v18  ;;  %v989_v21 = vadd.f32 %v1696_v7, %v1590_v29  ;;  %v1263_v24 = vmul.f32 %v2219_v35, %v981_v26  ;;  %v1219_v7 = vpop.permute.xlu1 %1218 }
 0x132   : > { %v1592_v30 = vpop.f32.mrf.mxu0  ;;  %v983_v20 = vpop.f32.mrf.mxu1 }
 0x133   : > { %v1265_v34 = vmul.f32 %v2231_v61, %v989_v21  ;;  %v1302_v36 = vadd.f32 %v2217_v32, %v1263_v24  ;;  %v1593_v37 = vadd.f32 %v1592_v30, %v1591_v6  ;;  %v984_v9 = vadd.f32 %v1587_v28, %v983_v20 }
 0x134   : > { %v1594_v12 = vpop.f32.mrf.mxu0  ;;  %v1700_v38 = vpop.f32.mrf.mxu1 }
 0x135   : > { %v1304_v40 = vadd.f32 %v2217_v32, %v1265_v34  ;;  %1334 = vst [vmem:[%s2227_s14 + $0x60] sm:$0xff] %v1302_v36  ;;  %v992_v35 = vadd.f32 %v1697_v50, %v1593_v37  ;;  %v1264_v43 = vmul.f32 %v2225_v54, %v984_v9  ;;  %v1229_v24 = vpop.permute.xlu1 %1228  ;;  %v1234_v37 = vpop.permute.xlu0 %1233 }
 0x136   : > { %v1595_v42 = vpop.f32.mrf.mxu0  ;;  %v996_v44 = vpop.f32.mrf.mxu1 }
 0x137   : > { %1336 = vst [vmem:[%s2227_s14 + $0x70] sm:$0xff] %v1304_v40  ;;  %v1266_v61 = vmul.f32 %v2239_v3, %v992_v35  ;;  %v1303_v52 = vadd.f32 %v2217_v32, %v1264_v43  ;;  %v1596_v11 = vadd.f32 %v1595_v42, %v1594_v12 }
 0x138   : > { %v1597_v55 = vpop.f32.mrf.mxu0  ;;  %v1701_v46 = vpop.f32.mrf.mxu1 }
 0x139   : > { %v1305_v33 = vadd.f32 %v2217_v32, %v1266_v61  ;;  %1335 = vst [vmem:[%s2227_s14 + $0x68] sm:$0xff] %v1303_v52  ;;  %v997_v1 = vadd.f32 %v1596_v11, %v996_v44  ;;  %v1638_v61 = vadd.f32 %v2199_v19, %v2197_v17  ;;  %v1244_v17 = vpop.permute.xlu0 %1243 }
 0x13a   : > { %v1598_v48 = vpop.f32.mrf.mxu0  ;;  %v999_v54 = vpop.f32.mrf.mxu1 }
 0x13b   : > { %1337 = vst [vmem:[%s2227_s14 + $0x78] sm:$0xff] %v1305_v33  ;;  %v1267_v58 = vmul.f32 %v2245_v31, %v997_v1  ;;  %v1599_v41 = vadd.f32 %v1598_v48, %v1597_v55  ;;  %v1239_v55 = vpop.permute.xlu1 %1238 }
 0x13c   : > { %v1600_v3 = vpop.f32.mrf.mxu0  ;;  %v2296_v62 = vpop.f32.mrf.mxu1 }
 0x13d   : > { %v1306_v23 = vadd.f32 %v2217_v32, %v1267_v58  ;;  %v1000_v63 = vadd.f32 %v1599_v41, %v999_v54 }
 0x13e   : > { %v1601_v0 = vpop.f32.mrf.mxu0  ;;  %v1012_v4 = vpop.f32.mrf.mxu1 }
 0x13f   : > { %1338 = vst [vmem:[%s2227_s14 + $0x80] sm:$0xff] %v1306_v23  ;;  %v1268_v39 = vmul.f32 %v2253_v45, %v1000_v63  ;;  %v1602_v49 = vadd.f32 %v1601_v0, %v1600_v3 }
 0x140   : > { %v1603_v14 = vpop.f32.mrf.mxu0  ;;  %v2301_v56 = vpop.f32.mrf.mxu1 }
 0x141   : > { %v1307_v31 = vadd.f32 %v2217_v32, %v1268_v39  ;;  %v1005_v18 = vadd.f32 %v1700_v38, %v1602_v49 }
 0x142   : > { %v1604_v29 = vpop.f32.mrf.mxu0  ;;  %v1015_v26 = vpop.f32.mrf.mxu1 }
 0x143   : > { %1339 = vst [vmem:[%s2227_s14 + $0x88] sm:$0xff] %v1307_v31  ;;  %v1269_v6 = vmul.f32 %v2258_v57, %v1005_v18  ;;  %v1605_v50 = vadd.f32 %v1604_v29, %v1603_v14 }
 0x144   : > { %v1606_v28 = vpop.f32.mrf.mxu0  ;;  %v1708_v21 = vpop.f32.mrf.mxu1 }
 0x145   : > { %v1308_v45 = vadd.f32 %v2217_v32, %v1269_v6  ;;  %v1008_v30 = vadd.f32 %v1701_v46, %v1605_v50  ;;  %v1037_v20 = vadd.f32 %v1708_v21, %v2179_v60 }
 0x146   : > { %v1607_v34 = vpop.f32.mrf.mxu0  ;;  %v1028_v36 = vpop.f32.mrf.mxu1 }
 0x147   : > { %1340 = vst [vmem:[%s2227_s14 + $0x90] sm:$0xff] %v1308_v45  ;;  %v1270_v9 = vmul.f32 %v2267_v10, %v1008_v30  ;;  %v1277_v12 = vmul.f32 %v1224_v13, %v1037_v20  ;;  %v1608_v38 = vadd.f32 %v1607_v34, %v1606_v28  ;;  %v1029_v57 = vadd.f32 %v2171_v47, %v1028_v36  ;;  %v1249_v13 = vpop.permute.xlu1 %1248 }
 0x148   : > { %v1609_v40 = vpop.f32.mrf.mxu0  ;;  %v1709_v35 = vpop.f32.mrf.mxu1 }
 0x149   : > { %v1309_v43 = vadd.f32 %v2217_v32, %v1270_v9  ;;  %v1316_v42 = vadd.f32 %v2217_v32, %v1277_v12  ;;  %v1013_v44 = vadd.f32 %v1608_v38, %v1012_v4  ;;  %v1275_v60 = vmul.f32 %v1214_v51, %v1029_v57 }
 0x14a   : > { %v1040_v52 = vadd.f32 %v1709_v35, %v2183_v2  ;;  %v1610_v10 = vpop.f32.mrf.mxu0  ;;  %v1031_v11 = vpop.f32.mrf.mxu1 }
 0x14b   : > { %1341 = vst [vmem:[%s2227_s14 + $0x98] sm:$0xff] %v1309_v43  ;;  %1348 = vst [vmem:[%s2227_s14 + $0xd0] sm:$0xff] %v1316_v42  ;;  %v1271_v47 = vmul.f32 %v2272_v16, %v1013_v44  ;;  %v1314_v46 = vadd.f32 %v2217_v32, %v1275_v60  ;;  %v1611_v33 = vadd.f32 %v1610_v10, %v1609_v40 }
 0x14c   : > { %v1032_v1 = vadd.f32 %v2175_v53, %v1031_v11  ;;  %v1278_v48 = vmul.f32 %v1229_v24, %v1040_v52  ;;  %v1612_v54 = vpop.f32.mrf.mxu0  ;;  %v1712_v51 = vpop.f32.mrf.mxu1  ;;  %v1641_v16 = vadd.f32 %v2207_v25, %v2203_v22 }
 0x14d   : > { %v1310_v2 = vadd.f32 %v2217_v32, %v1271_v47  ;;  %1346 = vst [vmem:[%s2227_s14 + $0xc0] sm:$0xff] %v1314_v46  ;;  %v1016_v19 = vadd.f32 %v1611_v33, %v1015_v26  ;;  %v1053_v41 = vadd.f32 %v1712_v51, %v1638_v61 }
 0x14e   : > { %v1276_v58 = vmul.f32 %v1219_v7, %v1032_v1  ;;  %v1317_v3 = vadd.f32 %v2217_v32, %v1278_v48  ;;  %v1613_v23 = vpop.f32.mrf.mxu0  ;;  %v1044_v63 = vpop.f32.mrf.mxu1 }
 0x14f   : > { %1342 = vst [vmem:[%s2227_s14 + $0xa0] sm:$0xff] %v1310_v2  ;;  %v1272_v53 = vmul.f32 %v2278_v5, %v1016_v19  ;;  %v1281_v4 = vmul.f32 %v1244_v17, %v1053_v41  ;;  %v1614_v39 = vadd.f32 %v1613_v23, %v1612_v54  ;;  %v1045_v7 = vadd.f32 %v2187_v8, %v1044_v63 }
 0x150   : > { %v1315_v0 = vadd.f32 %v2217_v32, %v1276_v58  ;;  %1349 = vst [vmem:[%s2227_s14 + $0xd8] sm:$0xff] %v1317_v3  ;;  %v1615_v49 = vpop.f32.mrf.mxu0  ;;  %v1713_v14 = vpop.f32.mrf.mxu1 }
 0x151   : > { %v1311_v22 = vadd.f32 %v2217_v32, %v1272_v53  ;;  %v1320_v25 = vadd.f32 %v2217_v32, %v1281_v4  ;;  %v1021_v31 = vadd.f32 %v2296_v62, %v1614_v39  ;;  %v1056_v5 = vadd.f32 %v1713_v14, %v1641_v16 }
 0x152   : > { %1347 = vst [vmem:[%s2227_s14 + $0xc8] sm:$0xff] %v1315_v0  ;;  %v1279_v18 = vmul.f32 %v1234_v37, %v1045_v7  ;;  %v1616_v29 = vpop.f32.mrf.mxu0  ;;  %v1047_v26 = vpop.f32.mrf.mxu1 }
 0x153   : > { %1343 = vst [vmem:[%s2227_s14 + $0xa8] sm:$0xff] %v1311_v22  ;;  %1352 = vst [vmem:[%s2227_s14 + $0xf0] sm:$0xff] %v1320_v25  ;;  %v1273_v8 = vmul.f32 %v2282_v59, %v1021_v31  ;;  %v1282_v6 = vmul.f32 %v1249_v13, %v1056_v5  ;;  %v1617_v50 = vadd.f32 %v1616_v29, %v1615_v49 }
 0x154   : > { %v1048_v28 = vadd.f32 %v2195_v15, %v1047_v26  ;;  %v1318_v62 = vadd.f32 %v2217_v32, %v1279_v18 }
 0x155   : > { %v1312_v21 = vadd.f32 %v2217_v32, %v1273_v8  ;;  %v1321_v24 = vadd.f32 %v2217_v32, %v1282_v6  ;;  %v1024_v45 = vadd.f32 %v2301_v56, %v1617_v50 }
 0x156   : > { %v1280_v30 = vmul.f32 %v1239_v55, %v1048_v28  ;;  %1350 = vst [vmem:[%s2227_s14 + $0xe0] sm:$0xff] %v1318_v62 }
 0x157   : > { %1344 = vst [vmem:[%s2227_s14 + $0xb0] sm:$0xff] %v1312_v21  ;;  %1353 = vst [vmem:[%s2227_s14 + $0xf8] sm:$0xff] %v1321_v24  ;;  %v1274_v15 = vmul.f32 %v2290_v27, %v1024_v45 }
 0x158   : > { %v1319_v59 = vadd.f32 %v2217_v32, %v1280_v30 }
 0x159   : > { %v1313_v56 = vadd.f32 %v2217_v32, %v1274_v15 }
 0x15a   : > { %1351 = vst [vmem:[%s2227_s14 + $0xe8] sm:$0xff] %v1319_v59 }
 0x15b   : > { %1345 = vst [vmem:[%s2227_s14 + $0xb8] sm:$0xff] %v1313_v56 }
 0x15c   : > { %1876 = shalt.err (!%p1873_p3)
}
 0x15d   : > { %s1877_s8 = scalar_lea.hbm %s2353_s29, 4096  ;;  %s1881_s7 = scalar_lea.hbm %s2406_s4, 8192 }
 0x15e   : > { %p1878_p4 = scmp.ne.s32.totalorder %s2353_s29, %s1877_s8  ;;  %p1882_p9 = scmp.lt.s32.totalorder %s2353_s29, %s2406_s4 }
 0x15f   : > { %p1883_p10 = scmp.lt.s32.totalorder %s1881_s7, %s1877_s8 }
 0x160   : > { %p1879_p7 = pnand %p1878_p4, %p1992_p5 }
 0x161   : > { %p1884_p11 = por %p1883_p10, %p1882_p9 }
 0x162   : > { %p1880_p8 = pneg %p1879_p7 }
 0x164   : > { %p1885_p12 = pnand %p1884_p11, %p1880_p8 }
 0x166   : > { %1888 = shalt.err (!%p1885_p12)
}
 0x167   : > { %s1927_s13 = smov 128   ;;  %s1928_s14 = smov 8  }
 0x168   : > { %1731 = dma.vmem_to_hbm [thread:$0]  (%p1992_p5), %s2355_s22, 4096, %s2353_s29, %s2362_s19, %s1927_s13, %s1927_s13, %s1928_s14  }
 0x169 PF: > { %p1737_p13 = scmp.ge.s32.totalorder %s1923_s18, 2  ;;  %s1383_s20 = sand.u32 1, %s1911_s15  }
 0x16a   : > { %s1384_s23 = scalar_lea.sflag [#allocation3], %s1383_s20 }
 0x16b   : > { %p1734_p0 = pnand %p1737_p13, %p1996_p6 }
 0x16d   : > { %p1735_p1 = pneg %p1734_p0 }
 0x16f   : > { %1906 = dma.done.wait (%p1735_p1), %s1384_s23, 4096  }
 0x170   : > { %1908 = vsyncadd (%p1735_p1), %s1384_s23, 4294963200  ;;  %p14_p2 = scmp.ge.s32.totalorder %s1979_s21, 4   ;;  %s2409_s15 = smov %s1915_s16 }
 0x171   : > { %s2410_s16 = smov %s1919_s17  ;;  %s2411_s17 = smov %s1990_s24 }
 0x172   : > { %s2412_s18 = smov %s1979_s21  ;;  %16 = sbr.rel (!%p14_p2) target bundleno = 3 (0x3), region = 74 }
 0x177   :  { %1389 = vsyncpa [#allocation3], 1 }
 0x178   :  { %1391 = vsyncpa [#allocation3 + $0x1], 1 }

// kernel: gcn_forward.5
= control target key start
LH: loop header
LB: loop body
LE: loop exit
PB: predicated region body
PF: predicated region fallthrough
CT: control target
= control target key end

     0   :  { %s2163_s15 = smov 0   ;;  %s2504_s0 = inlined_call_operand.vmem [shape: bf16[512,384], index: 0, kind: input, shape index: {}]   ;;  %s2505_s1 = inlined_call_operand.vmem [shape: bf16[384,128], index: 1, kind: input, shape index: {}]   ;;  %s2506_s2 = inlined_call_operand.vmem [shape: f32[512,1], index: 2, kind: input, shape index: {}]   ;;  %s2507_s3 = inlined_call_operand.vmem [shape: f32[1,128], index: 3, kind: input, shape index: {}]   ;;  %s2508_s4 = inlined_call_operand.vmem [shape: bf16[512,128], index: 4, kind: output, shape index: {}]  }
   0x1 LB: > { %s1584_s16 = sadd.s32 4294967295, %s2135_s15   ;;  %p1588_p0 = scmp.ge.s32.totalorder %s2135_s15, 1  ;;  %s2135_s15 = sphi %s2163_s15, %s14_s15  }
   0x2   : > { %p175_p1 = scmp.lt.s32.totalorder %s2135_s15, 3 }
   0x4   : > { %p176_p2 = pnand %p1588_p0, %p175_p1 }
   0x5   : > { %s1589_s19 = sshll.u32 (!%p176_p2), %s1584_s16, 5 }
   0x6   : > { %179 = sbr.rel (%p176_p2) target bundleno = 344 (0x158), region = 36  ;;  %p208_p3 = scmp.lt.s32.totalorder (!%p176_p2), %s1589_s19, 63 }
   0xb   : > { %v2041_v0 = vld [vmem:[%s2505_s1 + $0x78] sm:$0xff]   ;;  %v2043_v2 = vld [vmem:[%s2505_s1 + $0x70] sm:$0xff]   ;;  %v2045_v4 = vld [vmem:[%s2505_s1 + $0x68] sm:$0xff]   ;;  %v2137_v5 = vmov 0   ;;  %s2510_s19 = smov (!%p208_p3, %s1589_s19), 63 }
   0xc   : > { %v2042_v1 = vld [vmem:[%s2505_s1 + $0x38] sm:$0xff]   ;;  %1829 = vmatprep.subr.bf16.mxu0 %v2041_v0  ;;  %2013 = vmatprep.subr.bf16.mxu1 %v2041_v0  ;;  %v2044_v3 = vld [vmem:[%s2505_s1 + $0x30] sm:$0xff]   ;;  %v2046_v6 = vld [vmem:[%s2505_s1 + $0x28] sm:$0xff]   ;;  %s2029_s6 = smul.u32 12, %s2510_s19  ;;  %s1592_s8 = sshll.u32 %s2510_s19, 3 }
   0xd   : > { %1830 = vmatpush3.bf16.msra.mxu0 %v2042_v1  ;;  %2021 = vmatpush3.bf16.msra.mxu1 %v2042_v1  ;;  %v2047_v7 = vld [vmem:[%s2505_s1 + $0x60] sm:$0xff]   ;;  %v2049_v9 = vld [vmem:[%s2505_s1 + $0x58] sm:$0xff]   ;;  %v2051_v11 = vld [vmem:[%s2505_s1 + $0x50] sm:$0xff]   ;;  %s2251_s17 = scalar_lea.vmem %s2506_s2, %s1592_s8  ;;  %s1594_s28 = sshll.u32 %s2510_s19, 2 }
   0xe   : > { %1831 = vmatprep.subr.bf16.mxu0 %v2043_v2  ;;  %2014 = vmatprep.subr.bf16.mxu1 %v2043_v2  ;;  %v2048_v8 = vld [vmem:[%s2505_s1 + $0x20] sm:$0xff]   ;;  %s2204_s13 = scalar_lea.vmem %s2504_s0, %s2029_s6  ;;  %v2050_v10 = vld [vmem:[%s2505_s1 + $0x18] sm:$0xff]   ;;  %v2052_v14 = vld [vmem:[%s2505_s1 + $0x10] sm:$0xff]   ;;  %s2399_s5 = scalar_lea.vmem %s2508_s4, %s1594_s28 }
   0xf   : > { %2040 = vset.pattern.permute.xlu1 %v2137_v5  ;;  %2039 = vset.pattern.permute.xlu0 %v2137_v5  ;;  %v2059_v12 = vld [vmem:[%s2204_s13 + $0x4] ss:$12 sps:$4 sm:$0xff]   ;;  %v2053_v15 = vld [vmem:[%s2505_s1 + $0x48] sm:$0xff]   ;;  %v2063_v19 = vld [vmem:[%s2505_s1 + $0xb8] sm:$0xff]  }
  0x10   : > { %v2062_v13 = vld [vmem:[%s2204_s13 + $0x124] ss:$12 sps:$4 sm:$0xff]   ;;  %771 = vmatprep.mubr.bf16.mxu0 %v2059_v12  ;;  %v2054_v16 = vld [vmem:[%s2505_s1 + $0x8] sm:$0xff]   ;;  %v2073_v29 = vld [vmem:[%s2204_s13 + $0x34] ss:$12 sps:$4 sm:$0xff]  }
  0x11   : > { %1832 = vmatpush3.bf16.msra.mxu0 %v2044_v3  ;;  %2022 = vmatpush3.bf16.msra.mxu1 %v2044_v3  ;;  %v2055_v17 = vld [vmem:[%s2505_s1 + $0x40] sm:$0xff]   ;;  %v2065_v22 = vld [vmem:[%s2204_s13 + $0x1c] ss:$12 sps:$4 sm:$0xff]   ;;  %v2064_v23 = vld [vmem:[%s2505_s1 + $0xb0] sm:$0xff]  }
  0x12   : > { %1833 = vmatprep.subr.bf16.mxu0 %v2045_v4  ;;  %2015 = vmatprep.subr.bf16.mxu1 %v2045_v4  ;;  %v2056_v18 = vld [vmem:[%s2505_s1] sm:$0xff]   ;;  %v2067_v24 = vld [vmem:[%s2204_s13 + $0x13c] ss:$12 sps:$4 sm:$0xff]   ;;  %v1063_v31 = vld [vmem:[%s2251_s17 + $0x10] sm:$0xff] }
  0x13   : > { %867 = vmatprep.mubr.bf16.mxu1 %v2062_v13  ;;  %v2057_v20 = vld [vmem:[%s2204_s13] ss:$12 sps:$4 sm:$0xff]   ;;  %v2069_v25 = vld [vmem:[%s2204_s13 + $0x18] ss:$12 sps:$4 sm:$0xff]   ;;  %v2077_v34 = vld [vmem:[%s2204_s13 + $0x30] ss:$12 sps:$4 sm:$0xff]   ;;  %1105 = vperm.xlu1 %2040, %v1063_v31  }
  0x14   : > { %v2060_v21 = vld [vmem:[%s2204_s13 + $0x120] ss:$12 sps:$4 sm:$0xff]   ;;  %v2070_v27 = vld [vmem:[%s2204_s13 + $0x138] ss:$12 sps:$4 sm:$0xff]   ;;  %v2078_v35 = vld [vmem:[%s2204_s13 + $0x150] ss:$12 sps:$4 sm:$0xff]  }
  0x15   : > { %1834 = vmatpush3.bf16.msra.mxu0 %v2046_v6  ;;  %2023 = vmatpush3.bf16.msra.mxu1 %v2046_v6  ;;  %v2071_v26 = vld [vmem:[%s2505_s1 + $0xa8] sm:$0xff]   ;;  %v2072_v28 = vld [vmem:[%s2505_s1 + $0xa0] sm:$0xff]   ;;  %v2079_v33 = vld [vmem:[%s2505_s1 + $0x98] sm:$0xff]  }
  0x16   : > { %1835 = vmatprep.subr.bf16.mxu0 %v2047_v7  ;;  %2016 = vmatprep.subr.bf16.mxu1 %v2047_v7  ;;  %v2075_v30 = vld [vmem:[%s2204_s13 + $0x154] ss:$12 sps:$4 sm:$0xff]   ;;  %v1064_v36 = vld [vmem:[%s2251_s17 + $0x18] sm:$0xff]  ;;  %v1062_v37 = vld [vmem:[%s2251_s17 + $0x8] sm:$0xff] }
  0x17   : > { %v1061_v32 = vld [vmem:[%s2251_s17] sm:$0xff]  ;;  %v2081_v38 = vld [vmem:[%s2204_s13 + $0x4c] ss:$12 sps:$4 sm:$0xff]   ;;  %v2080_v39 = vld [vmem:[%s2505_s1 + $0x90] sm:$0xff]   ;;  %1110 = vperm.xlu1 %2040, %v1064_v36  }
  0x18   : > { %1095 = vperm.xlu0 %2039, %v1061_v32   ;;  %v2083_v40 = vld [vmem:[%s2204_s13 + $0x16c] ss:$12 sps:$4 sm:$0xff]   ;;  %v1065_v42 = vld [vmem:[%s2251_s17 + $0x20] sm:$0xff]  ;;  %v2085_v44 = vld [vmem:[%s2204_s13 + $0x48] ss:$12 sps:$4 sm:$0xff]  }
  0x19   : > { %1836 = vmatpush3.bf16.msra.mxu0 %v2048_v8  ;;  %2024 = vmatpush3.bf16.msra.mxu1 %v2048_v8  ;;  %v1066_v41 = vld [vmem:[%s2251_s17 + $0x28] sm:$0xff]  ;;  %v1068_v46 = vld [vmem:[%s2251_s17 + $0x38] sm:$0xff]  ;;  %v1067_v47 = vld [vmem:[%s2251_s17 + $0x30] sm:$0xff] }
  0x1a   : > { %1837 = vmatprep.subr.bf16.mxu0 %v2049_v9  ;;  %2017 = vmatprep.subr.bf16.mxu1 %v2049_v9  ;;  %v2087_v43 = vld [vmem:[%s2505_s1 + $0x88] sm:$0xff]   ;;  %v2088_v48 = vld [vmem:[%s2505_s1 + $0x80] sm:$0xff]   ;;  %v1072_v56 = vld [vmem:[%s2251_s17 + $0x58] sm:$0xff] }
  0x1b   : > { %v2086_v45 = vld [vmem:[%s2204_s13 + $0x168] ss:$12 sps:$4 sm:$0xff]   ;;  %1120 = vperm.xlu1 %2040, %v1066_v41   ;;  %v2089_v49 = vld [vmem:[%s2204_s13 + $0x64] ss:$12 sps:$4 sm:$0xff]   ;;  %v2092_v53 = vld [vmem:[%s2204_s13 + $0x60] ss:$12 sps:$4 sm:$0xff]  }
  0x1c   : > { %1100 = vperm.xlu0 %2039, %v1062_v37   ;;  %v2091_v50 = vld [vmem:[%s2204_s13 + $0x8] ss:$12 sps:$4 sm:$0xff]   ;;  %v1069_v52 = vld [vmem:[%s2251_s17 + $0x40] sm:$0xff]  ;;  %v2098_v62 = vld [vmem:[%s2204_s13 + $0x50] ss:$12 sps:$4 sm:$0xff]  }
  0x1d   : > { %1838 = vmatpush3.bf16.msra.mxu0 %v2050_v10  ;;  %2025 = vmatpush3.bf16.msra.mxu1 %v2050_v10  ;;  %v1070_v51 = vld [vmem:[%s2251_s17 + $0x48] sm:$0xff]  ;;  %v1071_v57 = vld [vmem:[%s2251_s17 + $0x50] sm:$0xff]  ;;  %v2096_v58 = vld [vmem:[%s2204_s13 + $0x38] ss:$12 sps:$4 sm:$0xff]  }
  0x1e   : > { %1839 = vmatprep.subr.bf16.mxu0 %v2051_v11  ;;  %2018 = vmatprep.subr.bf16.mxu1 %v2051_v11  ;;  %v2093_v54 = vld [vmem:[%s2204_s13 + $0x20] ss:$12 sps:$4 sm:$0xff]   ;;  %v2094_v55 = vld [vmem:[%s2204_s13 + $0x7c] ss:$12 sps:$4 sm:$0xff]   ;;  %v2097_v61 = vld [vmem:[%s2204_s13 + $0x78] ss:$12 sps:$4 sm:$0xff]  }
  0x1f   : > { %1130 = vperm.xlu1 %2040, %v1068_v46   ;;  %v1074_v59 = vld [vmem:[%s2251_s17 + $0x68] sm:$0xff]  ;;  %v1073_v60 = vld [vmem:[%s2251_s17 + $0x60] sm:$0xff]  ;;  %v1076_v63 = vld [vmem:[%s2251_s17 + $0x78] sm:$0xff] }
  0x20   : > { %1115 = vperm.xlu0 %2039, %v1065_v42   ;;  %v1075_v0 = vld [vmem:[%s2251_s17 + $0x70] sm:$0xff]  ;;  %v1078_v3 = vld [vmem:[%s2251_s17 + $0x88] sm:$0xff]  ;;  %v1077_v4 = vld [vmem:[%s2251_s17 + $0x80] sm:$0xff] }
  0x21   : > { %1840 = vmatpush3.bf16.msra.mxu0 %v2052_v14  ;;  %2026 = vmatpush3.bf16.msra.mxu1 %v2052_v14  ;;  %v2099_v1 = vld [vmem:[%s2204_s13 + $0x94] ss:$12 sps:$4 sm:$0xff]   ;;  %v2102_v5 = vld [vmem:[%s2204_s13 + $0x90] ss:$12 sps:$4 sm:$0xff]   ;;  %v2104_v9 = vld [vmem:[%s2204_s13 + $0xac] ss:$12 sps:$4 sm:$0xff]  }
  0x22   : > { %1841 = vmatprep.subr.bf16.mxu0 %v2053_v15  ;;  %2019 = vmatprep.subr.bf16.mxu1 %v2053_v15  ;;  %v2101_v2 = vld [vmem:[%s2204_s13 + $0x68] ss:$12 sps:$4 sm:$0xff]   ;;  %v2103_v6 = vld [vmem:[%s2204_s13 + $0x80] ss:$12 sps:$4 sm:$0xff]   ;;  %v1080_v7 = vld [vmem:[%s2251_s17 + $0x98] sm:$0xff] }
  0x23   : > { %1140 = vperm.xlu1 %2040, %v1070_v51   ;;  %v1079_v8 = vld [vmem:[%s2251_s17 + $0x90] sm:$0xff]  ;;  %v2106_v10 = vld [vmem:[%s2204_s13 + $0x98] ss:$12 sps:$4 sm:$0xff]   ;;  %v1082_v11 = vld [vmem:[%s2251_s17 + $0xa8] sm:$0xff] }
  0x24   : > { %1125 = vperm.xlu0 %2039, %v1067_v47   ;;  %v1081_v12 = vld [vmem:[%s2251_s17 + $0xa0] sm:$0xff]  ;;  %v2107_v13 = vld [vmem:[%s2204_s13 + $0xa8] ss:$12 sps:$4 sm:$0xff]   ;;  %v2108_v14 = vld [vmem:[%s2204_s13 + $0xb0] ss:$12 sps:$4 sm:$0xff]  }
  0x25   : > { %1842 = vmatpush3.bf16.msra.mxu0 %v2054_v16  ;;  %2027 = vmatpush3.bf16.msra.mxu1 %v2054_v16  ;;  %v1084_v15 = vld [vmem:[%s2251_s17 + $0xb8] sm:$0xff]  ;;  %v1083_v16 = vld [vmem:[%s2251_s17 + $0xb0] sm:$0xff]  ;;  %v2123_v36 = vld [vmem:[%s2204_s13 + $0x140] ss:$12 sps:$4 sm:$0xff]  }
  0x26   : > { %1843 = vmatprep.subr.bf16.mxu0 %v2055_v17  ;;  %2020 = vmatprep.subr.bf16.mxu1 %v2055_v17  ;;  %v2109_v17 = vld [vmem:[%s2204_s13 + $0xc4] ss:$12 sps:$4 sm:$0xff]   ;;  %v1092_v31 = vld [vmem:[%s2251_s17 + $0xf8] sm:$0xff] }
  0x27   : > { %1150 = vperm.xlu1 %2040, %v1072_v56   ;;  %v1091_v32 = vld [vmem:[%s2251_s17 + $0xf0] sm:$0xff]  ;;  %v2124_v37 = vld [vmem:[%s2204_s13 + $0x10c] ss:$12 sps:$4 sm:$0xff]  }
  0x28   : > { %1135 = vperm.xlu0 %2039, %v1069_v52  }
  0x29   : > { %1844 = vmatpush3.bf16.msra.mxu0 %v2056_v18  ;;  %2028 = vmatpush3.bf16.msra.mxu1 %v2056_v18  ;;  %v2111_v18 = vld [vmem:[%s2204_s13 + $0xc8] ss:$12 sps:$4 sm:$0xff]  }
  0x2a   : > { %1965 = vmatprep.subr.bf16.mxu1 %v2063_v19 }
  0x2b   : > { %1160 = vperm.xlu1 %2040, %v1074_v59  }
  0x2c   : > { %772 = vmatmul.mubr.bf16.vlgmr.msra.gmra.mxu0 %v2057_v20  ;;  %868 = vmatmul.mubr.bf16.vlgmr.msra.gmra.mxu1 %v2060_v21  ;;  %v1085_v20 = vld [vmem:[%s2251_s17 + $0xc0] sm:$0xff] }
  0x2d   : > { %1966 = vmatpush3.bf16.msra.mxu1 %v2063_v19  ;;  %779 = vmatprep.mubr.bf16.mxu0 %v2065_v22  ;;  %v1086_v19 = vld [vmem:[%s2251_s17 + $0xc8] sm:$0xff] }
  0x2e   : > { %1967 = vmatprep.subr.bf16.mxu1 %v2064_v23  ;;  %875 = vmatprep.mubr.bf16.mxu1 %v2067_v24  ;;  %v2112_v21 = vld [vmem:[%s2204_s13 + $0xc0] ss:$12 sps:$4 sm:$0xff]   ;;  %v1087_v24 = vld [vmem:[%s2251_s17 + $0xd0] sm:$0xff] }
  0x2f   : > { %1145 = vperm.xlu0 %2039, %v1071_v57   ;;  %1170 = vperm.xlu1 %2040, %v1076_v63   ;;  %v2113_v22 = vld [vmem:[%s2204_s13 + $0xe0] ss:$12 sps:$4 sm:$0xff]  }
  0x31   : > { %1968 = vmatpush3.bf16.msra.mxu1 %v2064_v23  ;;  %v1088_v23 = vld [vmem:[%s2251_s17 + $0xd8] sm:$0xff] }
  0x32   : > { %1969 = vmatprep.subr.bf16.mxu1 %v2071_v26 }
  0x33   : > { %1155 = vperm.xlu0 %2039, %v1073_v60   ;;  %1180 = vperm.xlu1 %2040, %v1078_v3  }
  0x34   : > { %780 = vmatmul.mubr.bf16.gmra.mxu0 %v2069_v25  ;;  %876 = vmatmul.mubr.bf16.gmra.mxu1 %v2070_v27  ;;  %v2114_v25 = vld [vmem:[%s2204_s13 + $0xdc] ss:$12 sps:$4 sm:$0xff]  }
  0x35   : > { %1970 = vmatpush3.bf16.msra.mxu1 %v2071_v26  ;;  %787 = vmatprep.mubr.bf16.mxu0 %v2073_v29  ;;  %v2116_v26 = vld [vmem:[%s2204_s13 + $0xf8] ss:$12 sps:$4 sm:$0xff]   ;;  %v1090_v27 = vld [vmem:[%s2251_s17 + $0xe8] sm:$0xff] }
  0x36   : > { %1971 = vmatprep.subr.bf16.mxu1 %v2072_v28  ;;  %883 = vmatprep.mubr.bf16.mxu1 %v2075_v30  ;;  %v2117_v29 = vld [vmem:[%s2204_s13 + $0xd8] ss:$12 sps:$4 sm:$0xff]   ;;  %v2118_v30 = vld [vmem:[%s2204_s13 + $0x110] ss:$12 sps:$4 sm:$0xff]  }
  0x37   : > { %1165 = vperm.xlu0 %2039, %v1075_v0   ;;  %1190 = vperm.xlu1 %2040, %v1080_v7  }
  0x39   : > { %1972 = vmatpush3.bf16.msra.mxu1 %v2072_v28  ;;  %v1089_v28 = vld [vmem:[%s2251_s17 + $0xe0] sm:$0xff] }
  0x3a   : > { %1973 = vmatprep.subr.bf16.mxu1 %v2079_v33 }
  0x3b   : > { %1175 = vperm.xlu0 %2039, %v1077_v4   ;;  %1200 = vperm.xlu1 %2040, %v1082_v11  }
  0x3c   : > { %788 = vmatmul.mubr.bf16.gmra.mxu0 %v2077_v34  ;;  %884 = vmatmul.mubr.bf16.gmra.mxu1 %v2078_v35  ;;  %v2121_v34 = vld [vmem:[%s2204_s13 + $0x128] ss:$12 sps:$4 sm:$0xff]   ;;  %v2122_v35 = vld [vmem:[%s2204_s13 + $0xf0] ss:$12 sps:$4 sm:$0xff]  }
  0x3d   : > { %1974 = vmatpush3.bf16.msra.mxu1 %v2079_v33  ;;  %795 = vmatprep.mubr.bf16.mxu0 %v2081_v38  ;;  %v2119_v33 = vld [vmem:[%s2204_s13 + $0xf4] ss:$12 sps:$4 sm:$0xff]   ;;  %v2126_v38 = vld [vmem:[%s2204_s13 + $0x158] ss:$12 sps:$4 sm:$0xff]  }
  0x3e   : > { %1975 = vmatprep.subr.bf16.mxu1 %v2080_v39  ;;  %891 = vmatprep.mubr.bf16.mxu1 %v2083_v40  ;;  %v2128_v40 = vld [vmem:[%s2204_s13 + $0x170] ss:$12 sps:$4 sm:$0xff]  }
  0x3f   : > { %1185 = vperm.xlu0 %2039, %v1079_v8   ;;  %1210 = vperm.xlu1 %2040, %v1084_v15  }
  0x41   : > { %1976 = vmatpush3.bf16.msra.mxu1 %v2080_v39  ;;  %v2127_v39 = vld [vmem:[%s2204_s13 + $0x108] ss:$12 sps:$4 sm:$0xff]  }
  0x42   : > { %1977 = vmatprep.subr.bf16.mxu1 %v2087_v43 }
  0x43   : > { %1195 = vperm.xlu0 %2039, %v1081_v12   ;;  %1220 = vperm.xlu1 %2040, %v1086_v19  }
  0x44   : > { %796 = vmatmul.mubr.bf16.gmra.mxu0 %v2085_v44  ;;  %892 = vmatmul.mubr.bf16.gmra.mxu1 %v2086_v45 }
  0x45   : > { %1978 = vmatpush3.bf16.msra.mxu1 %v2087_v43  ;;  %803 = vmatprep.mubr.bf16.mxu0 %v2089_v49 }
  0x46   : > { %1979 = vmatprep.subr.bf16.mxu1 %v2088_v48  ;;  %1981 = vmatprep.mubr.bf16.mxu1 %v2091_v50 }
  0x47   : > { %1205 = vperm.xlu0 %2039, %v1083_v16   ;;  %1230 = vperm.xlu1 %2040, %v1088_v23  }
  0x49   : > { %1980 = vmatpush3.bf16.msra.mxu1 %v2088_v48 }
  0x4b   : > { %1215 = vperm.xlu0 %2039, %v1085_v20   ;;  %1240 = vperm.xlu1 %2040, %v1090_v27  }
  0x4c   : > { %804 = vmatmul.mubr.bf16.gmra.mxu0 %v2092_v53  ;;  %1982 = vmatmul.mubr.bf16.vlgmr.msra.gmra.mxu1 %v2093_v54 }
  0x4d   : > { %811 = vmatprep.mubr.bf16.mxu0 %v2094_v55  ;;  %1985 = vmatprep.mubr.bf16.mxu1 %v2096_v58 }
  0x4f   : > { %1225 = vperm.xlu0 %2039, %v1087_v24   ;;  %1250 = vperm.xlu1 %2040, %v1092_v31  }
  0x53   : > { %1235 = vperm.xlu0 %2039, %v1089_v28  }
  0x54   : > { %812 = vmatmul.mubr.bf16.gmra.mxu0 %v2097_v61  ;;  %1986 = vmatmul.mubr.bf16.gmra.mxu1 %v2098_v62 }
  0x55   : > { %819 = vmatprep.mubr.bf16.mxu0 %v2099_v1  ;;  %1989 = vmatprep.mubr.bf16.mxu1 %v2101_v2 }
  0x57   : > { %1245 = vperm.xlu0 %2039, %v1091_v32  }
  0x5c   : > { %820 = vmatmul.mubr.bf16.gmra.mxu0 %v2102_v5  ;;  %1990 = vmatmul.mubr.bf16.gmra.mxu1 %v2103_v6 }
  0x5d   : > { %827 = vmatprep.mubr.bf16.mxu0 %v2104_v9  ;;  %1993 = vmatprep.mubr.bf16.mxu1 %v2106_v10 }
  0x64   : > { %828 = vmatmul.mubr.bf16.gmra.mxu0 %v2107_v13  ;;  %1994 = vmatmul.mubr.bf16.gmra.mxu1 %v2108_v14 }
  0x65   : > { %835 = vmatprep.mubr.bf16.mxu0 %v2109_v17  ;;  %1997 = vmatprep.mubr.bf16.mxu1 %v2111_v18 }
  0x6c   : > { %836 = vmatmul.mubr.bf16.gmra.mxu0 %v2112_v21  ;;  %1998 = vmatmul.mubr.bf16.gmra.mxu1 %v2113_v22 }
  0x6d   : > { %843 = vmatprep.mubr.bf16.mxu0 %v2114_v25  ;;  %2001 = vmatprep.mubr.bf16.mxu1 %v2116_v26 }
  0x74   : > { %844 = vmatmul.mubr.bf16.gmra.mxu0 %v2117_v29  ;;  %2002 = vmatmul.mubr.bf16.gmra.mxu1 %v2118_v30 }
  0x75   : > { %851 = vmatprep.mubr.bf16.mxu0 %v2119_v33  ;;  %2005 = vmatprep.mubr.bf16.mxu1 %v2121_v34 }
  0x7c   : > { %852 = vmatmul.mubr.bf16.gmra.mxu0 %v2122_v35  ;;  %2006 = vmatmul.mubr.bf16.gmra.mxu1 %v2123_v36 }
  0x7d   : > { %859 = vmatprep.mubr.bf16.mxu0 %v2124_v37  ;;  %2009 = vmatprep.mubr.bf16.mxu1 %v2126_v38 }
  0x84   : > { %860 = vmatmul.mubr.bf16.gmra.mxu0 %v2127_v39  ;;  %2010 = vmatmul.mubr.bf16.gmra.mxu1 %v2128_v40  ;;  %v2380_v39 = vld [vmem:[%s2507_s3] ss:$0 sm:$0xff] }
  0x8e   : > { %v1106_v46 = vpop.permute.xlu1 %1105 }
  0x92   : > { %v1111_v56 = vpop.permute.xlu1 %1110 }
  0x93   : > { %v2337_v41 = vpop.permute.xlu0 %1095 }
  0x96   : > { %v2349_v1 = vpop.permute.xlu1 %1120 }
  0x97   : > { %v2341_v50 = vpop.permute.xlu0 %1100 }
  0x9a   : > { %v2357_v11 = vpop.permute.xlu1 %1130 }
  0x9b   : > { %v2345_v59 = vpop.permute.xlu0 %1115 }
  0x9e   : > { %v2363_v20 = vpop.permute.xlu1 %1140 }
  0x9f   : > { %v1126_v5 = vpop.permute.xlu0 %1125 }
  0xa2   : > { %v2373_v30 = vpop.permute.xlu1 %1150 }
  0xa3   : > { %v2359_v14 = vpop.permute.xlu0 %1135 }
  0xaa   : > { %v2369_v24 = vpop.permute.xlu0 %1145 }
  0xae   : > { %v2375_v35 = vpop.permute.xlu0 %1155 }
  0xec   : > { %v1845_v42 = vpop.f32.mrf.mxu0  ;;  %v1917_v43 = vpop.f32.mrf.mxu1 }
  0xee   : > { %v1846_v44 = vpop.f32.mrf.mxu0  ;;  %v1918_v45 = vpop.f32.mrf.mxu1 }
  0xef   : > { %v2339_v47 = vadd.f32 %v1918_v45, %v1917_v43  ;;  %v1847_v31 = vadd.f32 %v1846_v44, %v1845_v42 }
  0xf0   : > { %v1848_v48 = vpop.f32.mrf.mxu0  ;;  %v1920_v49 = vpop.f32.mrf.mxu1 }
  0xf2   : > { %v1849_v51 = vpop.f32.mrf.mxu0  ;;  %v1921_v52 = vpop.f32.mrf.mxu1 }
  0xf3   : > { %v2343_v53 = vadd.f32 %v1921_v52, %v1920_v49  ;;  %v1850_v49 = vadd.f32 %v1849_v51, %v1848_v48 }
  0xf4   : > { %v1851_v54 = vpop.f32.mrf.mxu0  ;;  %v1923_v55 = vpop.f32.mrf.mxu1 }
  0xf6   : > { %v1852_v57 = vpop.f32.mrf.mxu0  ;;  %v1924_v58 = vpop.f32.mrf.mxu1 }
  0xf7   : > { %v2347_v60 = vadd.f32 %v1924_v58, %v1923_v55  ;;  %v1853_v27 = vadd.f32 %v1852_v57, %v1851_v54  ;;  %v2387_v54 = vpop.permute.xlu1 %1160 }
  0xf8   : > { %v1854_v61 = vpop.f32.mrf.mxu0  ;;  %v1926_v62 = vpop.f32.mrf.mxu1 }
  0xfa   : > { %v1855_v63 = vpop.f32.mrf.mxu0  ;;  %v1927_v0 = vpop.f32.mrf.mxu1 }
  0xfb   : > { %v2351_v2 = vadd.f32 %v1927_v0, %v1926_v62  ;;  %v1856_v36 = vadd.f32 %v1855_v63, %v1854_v61  ;;  %v2390_v63 = vpop.permute.xlu0 %1165 }
  0xfc   : > { %v1857_v3 = vpop.f32.mrf.mxu0  ;;  %v1929_v4 = vpop.f32.mrf.mxu1 }
  0xfe   : > { %v1858_v6 = vpop.f32.mrf.mxu0  ;;  %v1930_v7 = vpop.f32.mrf.mxu1 }
  0xff   : > { %v2353_v8 = vadd.f32 %v1930_v7, %v1929_v4  ;;  %v1859_v0 = vadd.f32 %v1858_v6, %v1857_v3 }
 0x100   : > { %v2355_v9 = vpop.f32.mrf.mxu0  ;;  %v1932_v10 = vpop.f32.mrf.mxu1 }
 0x102   : > { %v1861_v12 = vpop.f32.mrf.mxu0  ;;  %v1933_v13 = vpop.f32.mrf.mxu1 }
 0x103   : > { %v2361_v15 = vadd.f32 %v1933_v13, %v1932_v10 }
 0x104   : > { %v1863_v16 = vpop.f32.mrf.mxu0  ;;  %v1935_v17 = vpop.f32.mrf.mxu1 }
 0x106   : > { %v1864_v18 = vpop.f32.mrf.mxu0  ;;  %v1936_v19 = vpop.f32.mrf.mxu1 }
 0x107   : > { %v2365_v21 = vadd.f32 %v1936_v19, %v1935_v17 }
 0x108   : > { %v1866_v22 = vpop.f32.mrf.mxu0  ;;  %v2367_v23 = vpop.f32.mrf.mxu1 }
 0x10a   : > { %v1867_v25 = vpop.f32.mrf.mxu0  ;;  %v2371_v26 = vpop.f32.mrf.mxu1 }
 0x10c   : > { %v1869_v28 = vpop.f32.mrf.mxu0  ;;  %v1983_v29 = vpop.f32.mrf.mxu1 }
 0x10d   : > { %v943_v32 = vadd.f32 %v1983_v29, %v1853_v27 }
 0x10e   : > { %v1870_v33 = vpop.f32.mrf.mxu0  ;;  %v934_v34 = vpop.f32.mrf.mxu1 }
 0x10f   : > { %v1255_v37 = vmul.f32 %v1106_v46, %v943_v32  ;;  %v935_v38 = vadd.f32 %v1847_v31, %v934_v34  ;;  %v1865_v46 = vadd.f32 %v1864_v18, %v1863_v16 }
 0x110   : > { %v2382_v40 = vpop.f32.mrf.mxu0  ;;  %v1984_v43 = vpop.f32.mrf.mxu1 }
 0x111   : > { %v946_v45 = vadd.f32 %v1984_v43, %v1856_v36  ;;  %v1253_v42 = vmul.f32 %v2337_v41, %v935_v38  ;;  %v1294_v55 = vadd.f32 %v2380_v39, %v1255_v37  ;;  %v1868_v41 = vadd.f32 %v1867_v25, %v1866_v22  ;;  %v2402_v22 = vpop.permute.xlu1 %1170  ;;  %v2407_v37 = vpop.permute.xlu0 %1175 }
 0x112   : > { %v2385_v44 = vpop.f32.mrf.mxu0  ;;  %v937_v52 = vpop.f32.mrf.mxu1 }
 0x113   : > { %v1256_v57 = vmul.f32 %v1111_v56, %v946_v45  ;;  %v938_v58 = vadd.f32 %v1850_v49, %v937_v52  ;;  %v1292_v4 = vadd.f32 %v2380_v39, %v1253_v42  ;;  %v1326_v16 = vmax.f32 %v1294_v55, 0.0 }
 0x114   : > { %v1875_v61 = vpop.f32.mrf.mxu0  ;;  %v1987_v62 = vpop.f32.mrf.mxu1  ;;  %v1871_v42 = vadd.f32 %v1870_v33, %v1869_v28 }
 0x115   : > { %v1295_v48 = vadd.f32 %v2380_v39, %v1256_v57  ;;  %v959_v51 = vadd.f32 %v1987_v62, %v1865_v46  ;;  %v1254_v7 = vmul.f32 %v2341_v50, %v938_v58  ;;  %v1862_v50 = vadd.f32 %v1861_v12, %v2355_v9 }
 0x116   : > { %v1876_v10 = vpop.f32.mrf.mxu0  ;;  %v950_v13 = vpop.f32.mrf.mxu1  ;;  %v1324_v29 = vmax.f32 %v1292_v4, 0.0 }
 0x117   : > { %v1327_v17 = vmax.f32 %v1295_v48, 0.0  ;;  %v1259_v56 = vmul.f32 %v1126_v5, %v959_v51  ;;  %v951_v18 = vadd.f32 %v1859_v0, %v950_v13  ;;  %v1293_v3 = vadd.f32 %v2380_v39, %v1254_v7  ;;  %v2415_v0 = vpop.permute.xlu1 %1180  ;;  %v2419_v4 = vpop.permute.xlu0 %1185 }
 0x118   : > { %v1878_v6 = vpop.f32.mrf.mxu0  ;;  %v1988_v19 = vpop.f32.mrf.mxu1  ;;  %v1877_v38 = vadd.f32 %v1876_v10, %v1875_v61 }
 0x119   : > { %v1742_v25 = vpack.c.bf16 %v1327_v17, %v1326_v16  ;;  %v962_v27 = vadd.f32 %v1988_v19, %v1868_v41  ;;  %v1325_v31 = vmax.f32 %v1293_v3, 0.0  ;;  %v1298_v5 = vadd.f32 %v2380_v39, %v1259_v56 }
 0x11a   : > { %v1257_v32 = vmul.f32 %v2345_v59, %v951_v18  ;;  %v1879_v34 = vpop.f32.mrf.mxu0  ;;  %v953_v36 = vpop.f32.mrf.mxu1 }
 0x11b   : > { %1814 = vst [vmem:[%s2399_s5 + $0x8] sm:$0xff] %v1742_v25   ;;  %v1260_v43 = vmul.f32 %v2357_v11, %v962_v27  ;;  %v1737_v45 = vpack.c.bf16 %v1325_v31, %v1324_v29  ;;  %v954_v49 = vadd.f32 %v1862_v50, %v953_v36  ;;  %v1330_v55 = vmax.f32 %v1298_v5, 0.0  ;;  %v2427_v27 = vpop.permute.xlu1 %1190 }
 0x11c   : > { %v1881_v9 = vpop.f32.mrf.mxu0  ;;  %v1991_v12 = vpop.f32.mrf.mxu1  ;;  %v1296_v59 = vadd.f32 %v2380_v39, %v1257_v32  ;;  %v1880_v11 = vadd.f32 %v1879_v34, %v1878_v6 }
 0x11d   : > { %v1299_v52 = vadd.f32 %v2380_v39, %v1260_v43  ;;  %v975_v46 = vadd.f32 %v1991_v12, %v1877_v38  ;;  %1738 = vst [vmem:[%s2399_s5] sm:$0xff] %v1737_v45   ;;  %v1258_v57 = vmul.f32 %v2349_v1, %v954_v49  ;;  %v1874_v1 = vadd.f32 %v2385_v44, %v2382_v40  ;;  %v2433_v32 = vpop.permute.xlu0 %1195 }
 0x11e   : > { %v1882_v58 = vpop.f32.mrf.mxu0  ;;  %v966_v62 = vpop.f32.mrf.mxu1  ;;  %v1328_v13 = vmax.f32 %v1296_v59, 0.0 }
 0x11f   : > { %v1331_v61 = vmax.f32 %v1299_v52, 0.0  ;;  %v1263_v48 = vmul.f32 %v2369_v24, %v975_v46  ;;  %v967_v51 = vadd.f32 %v1871_v42, %v966_v62  ;;  %v1297_v28 = vadd.f32 %v2380_v39, %v1258_v57  ;;  %v2437_v57 = vpop.permute.xlu1 %1200 }
 0x120   : > { %v1884_v33 = vpop.f32.mrf.mxu0  ;;  %v1992_v41 = vpop.f32.mrf.mxu1  ;;  %v1883_v29 = vadd.f32 %v1882_v58, %v1881_v9 }
 0x121   : > { %v1752_v7 = vpack.c.bf16 %v1331_v61, %v1330_v55  ;;  %v978_v10 = vadd.f32 %v1992_v41, %v1880_v11  ;;  %v1329_v16 = vmax.f32 %v1297_v28, 0.0  ;;  %v1261_v17 = vmul.f32 %v2359_v14, %v967_v51  ;;  %v2441_v28 = vpop.permute.xlu0 %1205 }
 0x122   : > { %v1885_v56 = vpop.f32.mrf.mxu0  ;;  %v969_v18 = vpop.f32.mrf.mxu1  ;;  %v1302_v24 = vadd.f32 %v2380_v39, %v1263_v48 }
 0x123   : > { %1816 = vst [vmem:[%s2399_s5 + $0x18] sm:$0xff] %v1752_v7   ;;  %v1264_v3 = vmul.f32 %v2373_v30, %v978_v10  ;;  %v1747_v6 = vpack.c.bf16 %v1329_v16, %v1328_v13  ;;  %v970_v19 = vadd.f32 %v1874_v1, %v969_v18  ;;  %v1300_v44 = vadd.f32 %v2380_v39, %v1261_v17  ;;  %v2449_v18 = vpop.permute.xlu1 %1210 }
 0x124   : > { %v1887_v50 = vpop.f32.mrf.mxu0  ;;  %v1995_v25 = vpop.f32.mrf.mxu1  ;;  %v1334_v34 = vmax.f32 %v1302_v24, 0.0  ;;  %v1886_v12 = vadd.f32 %v1885_v56, %v1884_v33 }
 0x125   : > { %v1303_v40 = vadd.f32 %v2380_v39, %v1264_v3  ;;  %1815 = vst [vmem:[%s2399_s5 + $0x10] sm:$0xff] %v1747_v6   ;;  %v1262_v14 = vmul.f32 %v2363_v20, %v970_v19  ;;  %v1332_v46 = vmax.f32 %v1300_v44, 0.0 }
 0x126   : > { %v1888_v31 = vpop.f32.mrf.mxu0  ;;  %v982_v5 = vpop.f32.mrf.mxu1 }
 0x127   : > { %v1335_v30 = vmax.f32 %v1303_v40, 0.0  ;;  %v1889_v36 = vadd.f32 %v1888_v31, %v1887_v50  ;;  %v983_v38 = vadd.f32 %v1883_v29, %v982_v5  ;;  %v1301_v43 = vadd.f32 %v2380_v39, %v1262_v14  ;;  %v1216_v29 = vpop.permute.xlu0 %1215 }
 0x128   : > { %v1890_v45 = vpop.f32.mrf.mxu0  ;;  %v1996_v49 = vpop.f32.mrf.mxu1 }
 0x129   : > { %v1762_v9 = vpack.c.bf16 %v1335_v30, %v1334_v34  ;;  %v991_v42 = vadd.f32 %v1995_v25, %v1889_v36  ;;  %v1265_v52 = vmul.f32 %v2375_v35, %v983_v38  ;;  %v1333_v20 = vmax.f32 %v1301_v43, 0.0  ;;  %v1221_v43 = vpop.permute.xlu1 %1220 }
 0x12a   : > { %v1891_v55 = vpop.f32.mrf.mxu0  ;;  %v985_v59 = vpop.f32.mrf.mxu1 }
 0x12b   : > { %1818 = vst [vmem:[%s2399_s5 + $0x28] sm:$0xff] %v1762_v9   ;;  %v1267_v58 = vmul.f32 %v2390_v63, %v991_v42  ;;  %v1892_v62 = vadd.f32 %v1891_v55, %v1890_v45  ;;  %v986_v61 = vadd.f32 %v1886_v12, %v985_v59  ;;  %v1757_v11 = vpack.c.bf16 %v1333_v20, %v1332_v46 }
 0x12c   : > { %v1893_v48 = vpop.f32.mrf.mxu0  ;;  %v1999_v51 = vpop.f32.mrf.mxu1  ;;  %v1304_v33 = vadd.f32 %v2380_v39, %v1265_v52 }
 0x12d   : > { %v994_v35 = vadd.f32 %v1996_v49, %v1892_v62  ;;  %v1266_v41 = vmul.f32 %v2387_v54, %v986_v61  ;;  %1817 = vst [vmem:[%s2399_s5 + $0x20] sm:$0xff] %v1757_v11   ;;  %v1306_v7 = vadd.f32 %v2380_v39, %v1267_v58 }
 0x12e   : > { %v1894_v10 = vpop.f32.mrf.mxu0  ;;  %v998_v1 = vpop.f32.mrf.mxu1  ;;  %v1336_v24 = vmax.f32 %v1304_v33, 0.0 }
 0x12f   : > { %v1268_v13 = vmul.f32 %v2402_v22, %v994_v35  ;;  %v1305_v63 = vadd.f32 %v2380_v39, %v1266_v41  ;;  %v1895_v16 = vadd.f32 %v1894_v10, %v1893_v48  ;;  %v1338_v19 = vmax.f32 %v1306_v7, 0.0  ;;  %v1231_v33 = vpop.permute.xlu1 %1230 }
 0x130   : > { %v1896_v17 = vpop.f32.mrf.mxu0  ;;  %v2000_v56 = vpop.f32.mrf.mxu1 }
 0x131   : > { %v1307_v3 = vadd.f32 %v2380_v39, %v1268_v13  ;;  %v1337_v6 = vmax.f32 %v1305_v63, 0.0  ;;  %v999_v54 = vadd.f32 %v1895_v16, %v998_v1 }
 0x132   : > { %v1897_v50 = vpop.f32.mrf.mxu0  ;;  %v1001_v25 = vpop.f32.mrf.mxu1 }
 0x133   : > { %v1339_v40 = vmax.f32 %v1307_v3, 0.0  ;;  %v1767_v22 = vpack.c.bf16 %v1337_v6, %v1336_v24  ;;  %v1269_v44 = vmul.f32 %v2407_v37, %v999_v54  ;;  %v1898_v14 = vadd.f32 %v1897_v50, %v1896_v17  ;;  %v1226_v37 = vpop.permute.xlu0 %1225  ;;  %v1241_v50 = vpop.permute.xlu1 %1240 }
 0x134   : > { %v1899_v31 = vpop.f32.mrf.mxu0  ;;  %v2453_v5 = vpop.f32.mrf.mxu1 }
 0x135   : > { %v1772_v34 = vpack.c.bf16 %v1339_v40, %v1338_v19  ;;  %1819 = vst [vmem:[%s2399_s5 + $0x30] sm:$0xff] %v1767_v22   ;;  %v1002_v30 = vadd.f32 %v1898_v14, %v1001_v25  ;;  %v1308_v45 = vadd.f32 %v2380_v39, %v1269_v44 }
 0x136   : > { %v1900_v36 = vpop.f32.mrf.mxu0  ;;  %v1014_v38 = vpop.f32.mrf.mxu1 }
 0x137   : > { %1820 = vst [vmem:[%s2399_s5 + $0x38] sm:$0xff] %v1772_v34   ;;  %v1270_v49 = vmul.f32 %v2415_v0, %v1002_v30  ;;  %v1901_v9 = vadd.f32 %v1900_v36, %v1899_v31  ;;  %v1340_v59 = vmax.f32 %v1308_v45, 0.0  ;;  %v1236_v1 = vpop.permute.xlu0 %1235 }
 0x138   : > { %v1902_v12 = vpop.f32.mrf.mxu0  ;;  %v2459_v42 = vpop.f32.mrf.mxu1 }
 0x139   : > { %v1309_v52 = vadd.f32 %v2380_v39, %v1270_v49  ;;  %v1007_v46 = vadd.f32 %v1999_v51, %v1901_v9 }
 0x13a   : > { %v1903_v20 = vpop.f32.mrf.mxu0  ;;  %v1017_v55 = vpop.f32.mrf.mxu1 }
 0x13b   : > { %v1341_v58 = vmax.f32 %v1309_v52, 0.0  ;;  %v1271_v62 = vmul.f32 %v2419_v4, %v1007_v46  ;;  %v1904_v61 = vadd.f32 %v1903_v20, %v1902_v12  ;;  %v1246_v30 = vpop.permute.xlu0 %1245 }
 0x13c   : > { %v1905_v11 = vpop.f32.mrf.mxu0  ;;  %v2007_v48 = vpop.f32.mrf.mxu1 }
 0x13d   : > { %v1777_v0 = vpack.c.bf16 %v1341_v58, %v1340_v59  ;;  %v1010_v35 = vadd.f32 %v2000_v56, %v1904_v61  ;;  %v1039_v41 = vadd.f32 %v2007_v48, %v2347_v60  ;;  %v1310_v51 = vadd.f32 %v2380_v39, %v1271_v62 }
 0x13e   : > { %v1906_v7 = vpop.f32.mrf.mxu0  ;;  %v1030_v10 = vpop.f32.mrf.mxu1 }
 0x13f   : > { %1821 = vst [vmem:[%s2399_s5 + $0x40] sm:$0xff] %v1777_v0   ;;  %v1272_v13 = vmul.f32 %v2427_v27, %v1010_v35  ;;  %v1279_v63 = vmul.f32 %v1226_v37, %v1039_v41  ;;  %v1907_v16 = vadd.f32 %v1906_v7, %v1905_v11  ;;  %v1031_v4 = vadd.f32 %v2339_v47, %v1030_v10 }
 0x140   : > { %v1908_v17 = vpop.f32.mrf.mxu0  ;;  %v2008_v24 = vpop.f32.mrf.mxu1  ;;  %v1342_v25 = vmax.f32 %v1310_v51, 0.0 }
 0x141   : > { %v1311_v3 = vadd.f32 %v2380_v39, %v1272_v13  ;;  %v1015_v6 = vadd.f32 %v1907_v16, %v1014_v38  ;;  %v1042_v56 = vadd.f32 %v2008_v24, %v2351_v2  ;;  %v1277_v60 = vmul.f32 %v1216_v29, %v1031_v4 }
 0x142   : > { %v1909_v54 = vpop.f32.mrf.mxu0  ;;  %v1033_v19 = vpop.f32.mrf.mxu1  ;;  %v1318_v22 = vadd.f32 %v2380_v39, %v1279_v63  ;;  %v1940_v38 = vadd.f32 %v2371_v26, %v2367_v23 }
 0x143   : > { %v1343_v40 = vmax.f32 %v1311_v3, 0.0  ;;  %v1280_v27 = vmul.f32 %v1231_v33, %v1042_v56  ;;  %v1273_v44 = vmul.f32 %v2433_v32, %v1015_v6  ;;  %v1910_v47 = vadd.f32 %v1909_v54, %v1908_v17 }
 0x144   : > { %v1034_v14 = vadd.f32 %v2343_v53, %v1033_v19  ;;  %v1911_v31 = vpop.f32.mrf.mxu0  ;;  %v2011_v34 = vpop.f32.mrf.mxu1  ;;  %v1316_v45 = vadd.f32 %v2380_v39, %v1277_v60  ;;  %v1350_v37 = vmax.f32 %v1318_v22, 0.0 }
 0x145   : > { %v1782_v36 = vpack.c.bf16 %v1343_v40, %v1342_v25  ;;  %v1319_v2 = vadd.f32 %v2380_v39, %v1280_v27  ;;  %v1055_v29 = vadd.f32 %v2011_v34, %v2365_v21  ;;  %v1018_v49 = vadd.f32 %v1910_v47, %v1017_v55  ;;  %v1251_v55 = vpop.permute.xlu1 %1250 }
 0x146   : > { %v1278_v9 = vmul.f32 %v1221_v43, %v1034_v14  ;;  %v1912_v12 = vpop.f32.mrf.mxu0  ;;  %v1046_v32 = vpop.f32.mrf.mxu1  ;;  %v1312_v20 = vadd.f32 %v2380_v39, %v1273_v44  ;;  %v1348_v11 = vmax.f32 %v1316_v45, 0.0 }
 0x147   : > { %1822 = vst [vmem:[%s2399_s5 + $0x48] sm:$0xff] %v1782_v36   ;;  %v1351_v53 = vmax.f32 %v1319_v2, 0.0  ;;  %v1283_v52 = vmul.f32 %v1246_v30, %v1055_v29  ;;  %v1913_v46 = vadd.f32 %v1912_v12, %v1911_v31  ;;  %v1274_v59 = vmul.f32 %v2437_v57, %v1018_v49 }
 0x148   : > { %v1317_v21 = vadd.f32 %v2380_v39, %v1278_v9  ;;  %v1047_v23 = vadd.f32 %v2353_v8, %v1046_v32  ;;  %v1914_v26 = vpop.f32.mrf.mxu0  ;;  %v2012_v58 = vpop.f32.mrf.mxu1  ;;  %v1344_v51 = vmax.f32 %v1312_v20, 0.0 }
 0x149   : > { %v1802_v43 = vpack.c.bf16 %v1351_v53, %v1350_v37  ;;  %v1023_v62 = vadd.f32 %v2453_v5, %v1913_v46  ;;  %v1058_v61 = vadd.f32 %v2012_v58, %v1940_v38  ;;  %v1313_v48 = vadd.f32 %v2380_v39, %v1274_v59 }
 0x14a   : > { %v1349_v33 = vmax.f32 %v1317_v21, 0.0  ;;  %v1281_v0 = vmul.f32 %v1236_v1, %v1047_v23  ;;  %v1915_v35 = vpop.f32.mrf.mxu0  ;;  %v1049_v41 = vpop.f32.mrf.mxu1  ;;  %v1322_v57 = vadd.f32 %v2380_v39, %v1283_v52 }
 0x14b   : > { %1826 = vst [vmem:[%s2399_s5 + $0x68] sm:$0xff] %v1802_v43   ;;  %v1275_v8 = vmul.f32 %v2441_v28, %v1023_v62  ;;  %v1284_v7 = vmul.f32 %v1251_v55, %v1058_v61  ;;  %v1916_v10 = vadd.f32 %v1915_v35, %v1914_v26  ;;  %v1345_v13 = vmax.f32 %v1313_v48, 0.0 }
 0x14c   : > { %v1797_v5 = vpack.c.bf16 %v1349_v33, %v1348_v11  ;;  %v1050_v63 = vadd.f32 %v2361_v15, %v1049_v41  ;;  %v1320_v17 = vadd.f32 %v2380_v39, %v1281_v0  ;;  %v1354_v28 = vmax.f32 %v1322_v57, 0.0 }
 0x14d   : > { %v1323_v16 = vadd.f32 %v2380_v39, %v1284_v7  ;;  %v1026_v4 = vadd.f32 %v2459_v42, %v1916_v10  ;;  %v1787_v1 = vpack.c.bf16 %v1345_v13, %v1344_v51  ;;  %v1314_v3 = vadd.f32 %v2380_v39, %v1275_v8 }
 0x14e   : > { %1825 = vst [vmem:[%s2399_s5 + $0x60] sm:$0xff] %v1797_v5   ;;  %v1282_v24 = vmul.f32 %v1241_v50, %v1050_v63  ;;  %v1352_v54 = vmax.f32 %v1320_v17, 0.0 }
 0x14f   : > { %v1355_v6 = vmax.f32 %v1323_v16, 0.0  ;;  %v1276_v56 = vmul.f32 %v2449_v18, %v1026_v4  ;;  %1823 = vst [vmem:[%s2399_s5 + $0x50] sm:$0xff] %v1787_v1   ;;  %v1346_v25 = vmax.f32 %v1314_v3, 0.0 }
 0x150   : > { %v1321_v15 = vadd.f32 %v2380_v39, %v1282_v24 }
 0x151   : > { %v1812_v60 = vpack.c.bf16 %v1355_v6, %v1354_v28  ;;  %v1315_v42 = vadd.f32 %v2380_v39, %v1276_v56 }
 0x152   : > { %v1353_v19 = vmax.f32 %v1321_v15, 0.0 }
 0x153   : > { %1828 = vst [vmem:[%s2399_s5 + $0x78] sm:$0xff] %v1812_v60   ;;  %v1347_v40 = vmax.f32 %v1315_v42, 0.0 }
 0x154   : > { %v1807_v50 = vpack.c.bf16 %v1353_v19, %v1352_v54 }
 0x155   : > { %v1792_v22 = vpack.c.bf16 %v1347_v40, %v1346_v25 }
 0x156   : > { %1827 = vst [vmem:[%s2399_s5 + $0x70] sm:$0xff] %v1807_v50  }
 0x157   : > { %1824 = vst [vmem:[%s2399_s5 + $0x58] sm:$0xff] %v1792_v22  }
 0x158 PF: > { %s14_s15 = sadd.s32 1, %s2135_s15  }
 0x159   : > { %p11_p4 = scmp.ge.s32.totalorder %s14_s15, 4  }
 0x15b   :  { %13 = sbr.rel (!%p11_p4) target bundleno = 1 (0x1), region = 69 }

</bundles_post_ra>
